<compile_context>
chip_gen: v7x
topology: tpu7x:2x2x1
jax: 0.10.0
libtpu: 0.0.40
codegen_flags: <defaults>
</compile_context>

<pallas_src>
import functools

import jax
import jax.numpy as jnp
from jax.experimental import pallas as pl
from jax.experimental.pallas import tpu as pltpu


# ----------------------------------------------------------------------------
# Fused encoder kernel: one grid step == one transformer layer for Bt sequences
# ----------------------------------------------------------------------------

def _encoder_kernel(mbias_ref, x_ref,
                    wqkv_ref, bqkv_ref, wo_ref, bo_ref, ln1g_ref, ln1b_ref,
                    w1_ref, b1_ref, w2_ref, b2_ref, ln2g_ref, ln2b_ref,
                    o_ref, ctx_ref, *, num_heads, ln_eps):
    Bt, S, H = x_ref.shape
    Dh = H // num_heads
    scale = Dh ** -0.5
    cdt = jnp.bfloat16                       # MXU operand dtype

    def layer_norm(v, g, b):
        mean = jnp.mean(v, axis=-1, keepdims=True)
        c = v - mean
        var = jnp.mean(c * c, axis=-1, keepdims=True)
        return c * jax.lax.rsqrt(var + ln_eps) * g + b

    l = pl.program_id(1)

    # Layer 0: seed the resident activation (embeddings already LayerNorm-ed
    # in the wrapper); x_ref's block index is layer-invariant so it is only
    # DMA'd once per batch block.
    @pl.when(l == 0)
    def _():
        o_ref[...] = x_ref[...]

    x = o_ref[...]                           # (Bt, S, H) f32, resident in VMEM

    # --- fused QKV projection (bf16 operands, f32 accumulation) ---------------
    x2d = x.reshape(Bt * S, H).astype(cdt)
    qkv = jnp.dot(x2d, wqkv_ref[0].astype(cdt),
                  preferred_element_type=jnp.float32) + bqkv_ref[0]
    qkv = qkv.reshape(Bt, S, 3 * H)
    mbias = mbias_ref[...]                   # (Bt, 1, S) additive mask bias

    # --- per-head attention; context written to lane slices of ctx scratch ----
    # (single full-K output projection after the loop; no cross-head accumulator)
    for h in range(num_heads):
        lo = h * Dh
        hi = lo + Dh
        qh = qkv[:, :, lo:hi]                                    # (Bt, S, Dh)
        kh = qkv[:, :, H + lo:H + hi]
        vh = qkv[:, :, 2 * H + lo:2 * H + hi]
        s = jnp.einsum('bqd,bkd->bqk', qh.astype(cdt), kh.astype(cdt),
                       preferred_element_type=jnp.float32) * scale + mbias
        s = s - jnp.max(s, axis=-1, keepdims=True)
        pw = jnp.exp(s)
        pw = pw * pl.reciprocal(jnp.sum(pw, axis=-1, keepdims=True), approx=True)
        ctx_ref[:, :, lo:hi] = jnp.einsum(
            'bqk,bkd->bqd', pw.astype(cdt), vh.astype(cdt),
            preferred_element_type=jnp.float32).astype(cdt)

    # --- single (Bt*S, H) @ (H, H) output projection + residual + LN1 ---------
    attn = jnp.dot(ctx_ref[...].reshape(Bt * S, H), wo_ref[0].astype(cdt),
                   preferred_element_type=jnp.float32) + bo_ref[0]
    x1 = layer_norm(attn.reshape(Bt, S, H) + x, ln1g_ref[0], ln1b_ref[0])

    # --- FFN (GELU, tanh approx) + residual + LN2 ------------------------------
    hmid = jnp.dot(x1.reshape(Bt * S, H).astype(cdt), w1_ref[0].astype(cdt),
                   preferred_element_type=jnp.float32) + b1_ref[0]
    hmid = 0.5 * hmid * (1.0 + jnp.tanh(
        0.7978845608028654 * (hmid + 0.044715 * hmid * hmid * hmid)))
    ffn = jnp.dot(hmid.astype(cdt), w2_ref[0].astype(cdt),
                  preferred_element_type=jnp.float32) + b2_ref[0]

    o_ref[...] = layer_norm(ffn.reshape(Bt, S, H) + x1, ln2g_ref[0], ln2b_ref[0])


# ----------------------------------------------------------------------------
# Wrapper (embedding gather + embedding LN are plain-JAX glue)
# ----------------------------------------------------------------------------

def bert_encoder_forward(p, input_ids, token_type_ids, attention_mask,
                         *, batch_block=None):
    B, S = input_ids.shape
    H = p["word_emb"].shape[1]
    F = p["w1"].shape[-1]
    L = p["wqkv"].shape[0]
    NH = p["num_heads"]
    Bt = batch_block if batch_block is not None else B
    assert B % Bt == 0

    def ln(v, g, b):
        m = v.mean(-1, keepdims=True)
        c = v - m
        var = (c * c).mean(-1, keepdims=True)
        return c * jax.lax.rsqrt(var + 1e-12) * g + b

    emb = (p["word_emb"][input_ids]
           + p["pos_emb"][:S][None, :, :]
           + p["type_emb"][token_type_ids]).astype(jnp.float32)   # (B, S, H)
    # Embedding LayerNorm fused with the HBM-bound gather (review #10).
    x = ln(emb, p["emb_ln_g"], p["emb_ln_b"])

    # Fold the {0,1} mask into an additive bias ONCE (layer-invariant).
    mbias = ((attention_mask.astype(jnp.float32) - 1.0) * 1e9).reshape(B, 1, S)

    kernel = functools.partial(_encoder_kernel, num_heads=NH, ln_eps=1e-12)

    layer_w = lambda b, l: (l, 0, 0)    # per-layer stacked weights
    rows = lambda b, l: (b, 0, 0)       # per-batch-block activations / mask

    out = pl.pallas_call(
        kernel,
        out_shape=jax.ShapeDtypeStruct((B, S, H), jnp.float32),
        grid=(B // Bt, L),
        in_specs=[
            pl.BlockSpec((Bt, 1, S), rows),          # additive mask bias (f32)
            pl.BlockSpec((Bt, S, H), rows),          # pre-LN'd embeddings (f32)
            pl.BlockSpec((1, H, 3 * H), layer_w),    # Wqkv (bf16)
            pl.BlockSpec((1, 1, 3 * H), layer_w),    # bqkv
            pl.BlockSpec((1, H, H), layer_w),        # Wo (bf16)
            pl.BlockSpec((1, 1, H), layer_w),        # bo
            pl.BlockSpec((1, 1, H), layer_w),        # ln1 gamma
            pl.BlockSpec((1, 1, H), layer_w),        # ln1 beta
            pl.BlockSpec((1, H, F), layer_w),        # W1 (bf16)
            pl.BlockSpec((1, 1, F), layer_w),        # b1
            pl.BlockSpec((1, F, H), layer_w),        # W2 (bf16)
            pl.BlockSpec((1, 1, H), layer_w),        # b2
            pl.BlockSpec((1, 1, H), layer_w),        # ln2 gamma
            pl.BlockSpec((1, 1, H), layer_w),        # ln2 beta
        ],
        out_specs=pl.BlockSpec((Bt, S, H), rows),
        scratch_shapes=[pltpu.VMEM((Bt, S, H), jnp.bfloat16)],   # ctx scratch
        compiler_params=pltpu.CompilerParams(
            dimension_semantics=("parallel", "arbitrary"),
            # ~100 MiB is appropriate on v5e/v6e at production shapes; keep
            # <= 64 MiB so the same value is valid on v7x (64 MiB/TC).
            vmem_limit_bytes=64 * 1024 * 1024),
    )(mbias, x,
      p["wqkv"], p["bqkv"], p["wo"], p["bo"], p["ln1_g"], p["ln1_b"],
      p["w1"], p["b1"], p["w2"], p["b2"], p["ln2_g"], p["ln2_b"])

    return out


def basenet_forward(params, input_ids, token_type_ids, attention_mask):
    """BaseNet.forward == self.encoder(input_ids, token_type_ids, attention_mask)."""
    return bert_encoder_forward(params, input_ids, token_type_ids, attention_mask)


# ----------------------------------------------------------------------------
# Synthetic parameters + pure-JAX reference (for correctness check)
# ----------------------------------------------------------------------------

def init_params(key, *, vocab=50, max_pos=16, type_vocab=2,
                hidden=32, num_heads=4, ffn=64, num_layers=2):
    H, F, L = hidden, ffn, num_layers
    keys = iter(jax.random.split(key, 5 + 12 * L))

    def normal(shape, std=0.02):
        return std * jax.random.normal(next(keys), shape, dtype=jnp.float32)

    def stack(shape, std=0.02, base=0.0, dtype=jnp.float32):
        return jnp.stack([base + normal(shape, std) for _ in range(L)]).astype(dtype)

    bf16 = jnp.bfloat16
    return {
        "word_emb": normal((vocab, H)),
        "pos_emb": normal((max_pos, H)),
        "type_emb": normal((type_vocab, H)),
        "emb_ln_g": 1.0 + normal((1, H)),
        "emb_ln_b": normal((1, H)),
        "wqkv": stack((H, 3 * H), dtype=bf16),
        "bqkv": stack((1, 3 * H)),
        "wo": stack((H, H), dtype=bf16),
        "bo": stack((1, H)),
        "ln1_g": stack((1, H), base=1.0),
        "ln1_b": stack((1, H)),
        "w1": stack((H, F), dtype=bf16),
        "b1": stack((1, F)),
        "w2": stack((F, H), dtype=bf16),
        "b2": stack((1, H)),
        "ln2_g": stack((1, H), base=1.0),
        "ln2_b": stack((1, H)),
        "num_heads": num_heads,
    }


def reference_forward(p, input_ids, token_type_ids, attention_mask):
    B, S = input_ids.shape
    H = p["word_emb"].shape[1]
    NH = p["num_heads"]
    Dh = H // NH
    L = p["wqkv"].shape[0]

    def ln(x, g, b):
        m = x.mean(-1, keepdims=True)
        v = ((x - m) ** 2).mean(-1, keepdims=True)
        return (x - m) / jnp.sqrt(v + 1e-12) * g + b

    emb = (p["word_emb"][input_ids]
           + p["pos_emb"][:S][None, :, :]
           + p["type_emb"][token_type_ids])
    x = ln(emb, p["emb_ln_g"], p["emb_ln_b"])
    bias = (attention_mask.astype(jnp.float32) - 1.0) * 1e9           # (B, S)

    for l in range(L):
        qkv = x @ p["wqkv"][l].astype(jnp.float32) + p["bqkv"][l]
        q, k, v = jnp.split(qkv, 3, axis=-1)
        split = lambda t: t.reshape(B, S, NH, Dh).transpose(0, 2, 1, 3)
        qh, kh, vh = split(q), split(k), split(v)
        s = jnp.einsum("bhqd,bhkd->bhqk", qh, kh) / jnp.sqrt(Dh)
        s = s + bias[:, None, None, :]
        pw = jax.nn.softmax(s, axis=-1)
        ctx = jnp.einsum("bhqk,bhkd->bhqd", pw, vh)
        ctx = ctx.transpose(0, 2, 1, 3).reshape(B, S, H)
        attn = ctx @ p["wo"][l].astype(jnp.float32) + p["bo"][l]
        x = ln(attn + x, p["ln1_g"][l], p["ln1_b"][l])
        h = x @ p["w1"][l].astype(jnp.float32) + p["b1"][l]
        h = 0.5 * h * (1.0 + jnp.tanh(0.7978845608028654 * (h + 0.044715 * h ** 3)))
        f = h @ p["w2"][l].astype(jnp.float32) + p["b2"][l]
        x = ln(f + x, p["ln2_g"][l], p["ln2_b"][l])
    return x


# ----------------------------------------------------------------------------

if __name__ == "__main__":
    key = jax.random.PRNGKey(0)
    pkey, ikey = jax.random.split(key)

    B, S = 2, 8
    params = init_params(pkey, vocab=50, max_pos=16, type_vocab=2,
                         hidden=32, num_heads=4, ffn=64, num_layers=2)

    input_ids = jax.random.randint(ikey, (B, S), 0, 50, dtype=jnp.int32)
    token_type_ids = jnp.zeros((B, S), jnp.int32)
    attention_mask = jnp.ones((B, S), jnp.int32)

    out = basenet_forward(params, input_ids, token_type_ids, attention_mask)
    out = jax.block_until_ready(out)

    ref = reference_forward(params, input_ids, token_type_ids, attention_mask)
    assert out.shape == (B, S, 32)
    assert bool(jnp.all(jnp.isfinite(out)))
    err = float(jnp.max(jnp.abs(out - ref)))
    # bf16 matmul operands + approx reciprocal -> slightly wider tolerance.
    assert err < 2e-2, err
    print("KERNEL_OK")
</pallas_src>

<mosaic_0001>
module attributes {stable_mosaic.version = 11 : i64} {
  func.func @_encoder_kernel(%arg0: i32, %arg1: i32, %arg2: memref<2x1x8xf32, #tpu.memory_space<vmem>>, %arg3: memref<2x8x32xf32, #tpu.memory_space<vmem>>, %arg4: memref<1x32x96xbf16, #tpu.memory_space<vmem>>, %arg5: memref<1x1x96xf32, #tpu.memory_space<vmem>>, %arg6: memref<1x32x32xbf16, #tpu.memory_space<vmem>>, %arg7: memref<1x1x32xf32, #tpu.memory_space<vmem>>, %arg8: memref<1x1x32xf32, #tpu.memory_space<vmem>>, %arg9: memref<1x1x32xf32, #tpu.memory_space<vmem>>, %arg10: memref<1x32x64xbf16, #tpu.memory_space<vmem>>, %arg11: memref<1x1x64xf32, #tpu.memory_space<vmem>>, %arg12: memref<1x64x32xbf16, #tpu.memory_space<vmem>>, %arg13: memref<1x1x32xf32, #tpu.memory_space<vmem>>, %arg14: memref<1x1x32xf32, #tpu.memory_space<vmem>>, %arg15: memref<1x1x32xf32, #tpu.memory_space<vmem>>, %arg16: memref<2x8x32xf32, #tpu.memory_space<vmem>>, %arg17: memref<2x8x32xbf16, #tpu.memory_space<vmem>>) attributes {dimension_semantics = [#tpu.dimension_semantics<parallel>, #tpu.dimension_semantics<arbitrary>], iteration_bounds = array<i64: 1, 2>, scalar_prefetch = 0 : i64, scratch_operands = 1 : i64, tpu.core_type = #tpu.core_type<tc>, window_params = [{transform_indices = @transform_0, window_bounds = array<i64: 2, 1, 8>}, {transform_indices = @transform_1, window_bounds = array<i64: 2, 8, 32>}, {transform_indices = @transform_2, window_bounds = array<i64: 1, 32, 96>}, {transform_indices = @transform_3, window_bounds = array<i64: 1, 1, 96>}, {transform_indices = @transform_4, window_bounds = array<i64: 1, 32, 32>}, {transform_indices = @transform_5, window_bounds = array<i64: 1, 1, 32>}, {transform_indices = @transform_6, window_bounds = array<i64: 1, 1, 32>}, {transform_indices = @transform_7, window_bounds = array<i64: 1, 1, 32>}, {transform_indices = @transform_8, window_bounds = array<i64: 1, 32, 64>}, {transform_indices = @transform_9, window_bounds = array<i64: 1, 1, 64>}, {transform_indices = @transform_10, window_bounds = array<i64: 1, 64, 32>}, {transform_indices = @transform_11, window_bounds = array<i64: 1, 1, 32>}, {transform_indices = @transform_12, window_bounds = array<i64: 1, 1, 32>}, {transform_indices = @transform_13, window_bounds = array<i64: 1, 1, 32>}, {transform_indices = @transform_14, window_bounds = array<i64: 2, 8, 32>}]} {
    %c0_i32 = arith.constant 0 : i32
    %0 = arith.cmpi eq, %arg1, %c0_i32 : i32
    %1 = arith.extui %0 : i1 to i32
    %c0_i32_0 = arith.constant 0 : i32
    %2 = arith.cmpi ne, %1, %c0_i32_0 : i32
    scf.if %2 {
      %c0_94 = arith.constant 0 : index
      %c0_95 = arith.constant 0 : index
      %c0_96 = arith.constant 0 : index
      %211 = vector.load %arg3[%c0_94, %c0_95, %c0_96] : memref<2x8x32xf32, #tpu.memory_space<vmem>>, vector<2x8x32xf32>
      %c0_97 = arith.constant 0 : index
      %c0_98 = arith.constant 0 : index
      %c0_99 = arith.constant 0 : index
      %212 = vector.load %arg16[%c0_97, %c0_98, %c0_99] : memref<2x8x32xf32, #tpu.memory_space<vmem>>, vector<2x8x32xf32>
      tpu.vector_store %arg16[%c0_97, %c0_98, %c0_99], %211 {strides = array<i32>} : memref<2x8x32xf32, #tpu.memory_space<vmem>>, vector<2x8x32xf32>,
    } else {
    }
    %c0 = arith.constant 0 : index
    %c0_1 = arith.constant 0 : index
    %c0_2 = arith.constant 0 : index
    %3 = vector.load %arg16[%c0, %c0_1, %c0_2] : memref<2x8x32xf32, #tpu.memory_space<vmem>>, vector<2x8x32xf32>
    %4 = vector.shape_cast %3 : vector<2x8x32xf32> to vector<16x32xf32>
    %5 = arith.truncf %4 : vector<16x32xf32> to vector<16x32xbf16>
    %c0_3 = arith.constant 0 : index
    %c0_4 = arith.constant 0 : index
    %c0_5 = arith.constant 0 : index
    %6 = vector.load %arg4[%c0_3, %c0_4, %c0_5] : memref<1x32x96xbf16, #tpu.memory_space<vmem>>, vector<1x32x96xbf16>
    %7 = vector.shape_cast %6 : vector<1x32x96xbf16> to vector<32x96xbf16>
    %cst = arith.constant dense<0.000000e+00> : vector<16x96xf32>
    %8 = tpu.matmul %5, %7, %cst {dimension_numbers = #tpu.dot_dimension_numbers<[1], [0], [0], [1], [0, 0, 1, 1], [], []>} : vector<16x32xbf16>, vector<32x96xbf16>, vector<16x96xf32> -> vector<16x96xf32>
    %c0_6 = arith.constant 0 : index
    %c0_7 = arith.constant 0 : index
    %c0_8 = arith.constant 0 : index
    %9 = vector.load %arg5[%c0_6, %c0_7, %c0_8] : memref<1x1x96xf32, #tpu.memory_space<vmem>>, vector<1x1x96xf32>
    %10 = vector.shape_cast %9 : vector<1x1x96xf32> to vector<1x96xf32>
    %11 = vector.broadcast %10 : vector<1x96xf32> to vector<16x96xf32>
    %12 = arith.addf %8, %11 : vector<16x96xf32>
    %13 = vector.shape_cast %12 : vector<16x96xf32> to vector<2x8x96xf32>
    %c0_9 = arith.constant 0 : index
    %c0_10 = arith.constant 0 : index
    %c0_11 = arith.constant 0 : index
    %14 = vector.load %arg2[%c0_9, %c0_10, %c0_11] : memref<2x1x8xf32, #tpu.memory_space<vmem>>, vector<2x1x8xf32>
    %15 = vector.extract_strided_slice %13 {offsets = [0, 0, 0], sizes = [2, 8, 8], strides = [1, 1, 1]} : vector<2x8x96xf32> to vector<2x8x8xf32>
    %16 = vector.extract_strided_slice %13 {offsets = [0, 0, 32], sizes = [2, 8, 8], strides = [1, 1, 1]} : vector<2x8x96xf32> to vector<2x8x8xf32>
    %17 = vector.extract_strided_slice %13 {offsets = [0, 0, 64], sizes = [2, 8, 8], strides = [1, 1, 1]} : vector<2x8x96xf32> to vector<2x8x8xf32>
    %18 = arith.truncf %15 : vector<2x8x8xf32> to vector<2x8x8xbf16>
    %19 = arith.truncf %16 : vector<2x8x8xf32> to vector<2x8x8xbf16>
    "tpu.trace_start"() <{level = 10 : i32, message = "bqd,bkd->bqk"}> : () -> ()
    %cst_12 = arith.constant dense<0.000000e+00> : vector<2x8x8xf32>
    %20 = tpu.matmul %18, %19, %cst_12 {dimension_numbers = #tpu.dot_dimension_numbers<[2], [2], [1], [1], [0, 0, 0, 1, 1, 1], [0], [0]>} : vector<2x8x8xbf16>, vector<2x8x8xbf16>, vector<2x8x8xf32> -> vector<2x8x8xf32>
    "tpu.trace_stop"() : () -> ()
    %cst_13 = arith.constant 0.353553385 : f32
    %21 = vector.broadcast %cst_13 : f32 to vector<2x8x8xf32>
    %22 = arith.mulf %20, %21 : vector<2x8x8xf32>
    %23 = vector.broadcast %14 : vector<2x1x8xf32> to vector<2x8x8xf32>
    %24 = arith.addf %22, %23 : vector<2x8x8xf32>
    %cst_14 = arith.constant dense<0xFF800000> : vector<2x8xf32>
    %25 = vector.multi_reduction <maximumf>, %24, %cst_14 [2] : vector<2x8x8xf32> to vector<2x8xf32>
    %26 = vector.shape_cast %25 : vector<2x8xf32> to vector<2x8x1xf32>
    %27 = vector.broadcast %26 : vector<2x8x1xf32> to vector<2x8x8xf32>
    %28 = arith.subf %24, %27 : vector<2x8x8xf32>
    %29 = math.exp %28 : vector<2x8x8xf32>
    %cst_15 = arith.constant dense<0.000000e+00> : vector<2x8xf32>
    %30 = vector.multi_reduction <add>, %29, %cst_15 [2] : vector<2x8x8xf32> to vector<2x8xf32>
    %31 = vector.shape_cast %30 : vector<2x8xf32> to vector<2x8x1xf32>
    %32 = tpu.reciprocal %31 {approx = true} : vector<2x8x1xf32> -> vector<2x8x1xf32>
    %33 = vector.broadcast %32 : vector<2x8x1xf32> to vector<2x8x8xf32>
    %34 = arith.mulf %29, %33 : vector<2x8x8xf32>
    %35 = arith.truncf %34 : vector<2x8x8xf32> to vector<2x8x8xbf16>
    %36 = arith.truncf %17 : vector<2x8x8xf32> to vector<2x8x8xbf16>
    "tpu.trace_start"() <{level = 10 : i32, message = "bqk,bkd->bqd"}> : () -> ()
    %cst_16 = arith.constant dense<0.000000e+00> : vector<2x8x8xf32>
    %37 = tpu.matmul %35, %36, %cst_16 {dimension_numbers = #tpu.dot_dimension_numbers<[2], [1], [1], [2], [0, 0, 0, 1, 1, 2], [0], [0]>} : vector<2x8x8xbf16>, vector<2x8x8xbf16>, vector<2x8x8xf32> -> vector<2x8x8xf32>
    "tpu.trace_stop"() : () -> ()
    %38 = arith.truncf %37 : vector<2x8x8xf32> to vector<2x8x8xbf16>
    %c0_17 = arith.constant 0 : index
    %c0_18 = arith.constant 0 : index
    %c0_19 = arith.constant 0 : index
    %39 = vector.load %arg17[%c0_17, %c0_18, %c0_19] : memref<2x8x32xbf16, #tpu.memory_space<vmem>>, vector<2x8x8xbf16>
    tpu.vector_store %arg17[%c0_17, %c0_18, %c0_19], %38 {strides = array<i32>} : memref<2x8x32xbf16, #tpu.memory_space<vmem>>, vector<2x8x8xbf16>,
    %40 = vector.extract_strided_slice %13 {offsets = [0, 0, 8], sizes = [2, 8, 8], strides = [1, 1, 1]} : vector<2x8x96xf32> to vector<2x8x8xf32>
    %41 = vector.extract_strided_slice %13 {offsets = [0, 0, 40], sizes = [2, 8, 8], strides = [1, 1, 1]} : vector<2x8x96xf32> to vector<2x8x8xf32>
    %42 = vector.extract_strided_slice %13 {offsets = [0, 0, 72], sizes = [2, 8, 8], strides = [1, 1, 1]} : vector<2x8x96xf32> to vector<2x8x8xf32>
    %43 = arith.truncf %40 : vector<2x8x8xf32> to vector<2x8x8xbf16>
    %44 = arith.truncf %41 : vector<2x8x8xf32> to vector<2x8x8xbf16>
    "tpu.trace_start"() <{level = 10 : i32, message = "bqd,bkd->bqk"}> : () -> ()
    %cst_20 = arith.constant dense<0.000000e+00> : vector<2x8x8xf32>
    %45 = tpu.matmul %43, %44, %cst_20 {dimension_numbers = #tpu.dot_dimension_numbers<[2], [2], [1], [1], [0, 0, 0, 1, 1, 1], [0], [0]>} : vector<2x8x8xbf16>, vector<2x8x8xbf16>, vector<2x8x8xf32> -> vector<2x8x8xf32>
    "tpu.trace_stop"() : () -> ()
    %cst_21 = arith.constant 0.353553385 : f32
    %46 = vector.broadcast %cst_21 : f32 to vector<2x8x8xf32>
    %47 = arith.mulf %45, %46 : vector<2x8x8xf32>
    %48 = vector.broadcast %14 : vector<2x1x8xf32> to vector<2x8x8xf32>
    %49 = arith.addf %47, %48 : vector<2x8x8xf32>
    %cst_22 = arith.constant dense<0xFF800000> : vector<2x8xf32>
    %50 = vector.multi_reduction <maximumf>, %49, %cst_22 [2] : vector<2x8x8xf32> to vector<2x8xf32>
    %51 = vector.shape_cast %50 : vector<2x8xf32> to vector<2x8x1xf32>
    %52 = vector.broadcast %51 : vector<2x8x1xf32> to vector<2x8x8xf32>
    %53 = arith.subf %49, %52 : vector<2x8x8xf32>
    %54 = math.exp %53 : vector<2x8x8xf32>
    %cst_23 = arith.constant dense<0.000000e+00> : vector<2x8xf32>
    %55 = vector.multi_reduction <add>, %54, %cst_23 [2] : vector<2x8x8xf32> to vector<2x8xf32>
    %56 = vector.shape_cast %55 : vector<2x8xf32> to vector<2x8x1xf32>
    %57 = tpu.reciprocal %56 {approx = true} : vector<2x8x1xf32> -> vector<2x8x1xf32>
    %58 = vector.broadcast %57 : vector<2x8x1xf32> to vector<2x8x8xf32>
    %59 = arith.mulf %54, %58 : vector<2x8x8xf32>
    %60 = arith.truncf %59 : vector<2x8x8xf32> to vector<2x8x8xbf16>
    %61 = arith.truncf %42 : vector<2x8x8xf32> to vector<2x8x8xbf16>
    "tpu.trace_start"() <{level = 10 : i32, message = "bqk,bkd->bqd"}> : () -> ()
    %cst_24 = arith.constant dense<0.000000e+00> : vector<2x8x8xf32>
    %62 = tpu.matmul %60, %61, %cst_24 {dimension_numbers = #tpu.dot_dimension_numbers<[2], [1], [1], [2], [0, 0, 0, 1, 1, 2], [0], [0]>} : vector<2x8x8xbf16>, vector<2x8x8xbf16>, vector<2x8x8xf32> -> vector<2x8x8xf32>
    "tpu.trace_stop"() : () -> ()
    %63 = arith.truncf %62 : vector<2x8x8xf32> to vector<2x8x8xbf16>
    %c0_25 = arith.constant 0 : index
    %c0_26 = arith.constant 0 : index
    %c8 = arith.constant 8 : index
    %64 = vector.load %arg17[%c0_25, %c0_26, %c8] : memref<2x8x32xbf16, #tpu.memory_space<vmem>>, vector<2x8x8xbf16>
    tpu.vector_store %arg17[%c0_25, %c0_26, %c8], %63 {strides = array<i32>} : memref<2x8x32xbf16, #tpu.memory_space<vmem>>, vector<2x8x8xbf16>,
    %65 = vector.extract_strided_slice %13 {offsets = [0, 0, 16], sizes = [2, 8, 8], strides = [1, 1, 1]} : vector<2x8x96xf32> to vector<2x8x8xf32>
    %66 = vector.extract_strided_slice %13 {offsets = [0, 0, 48], sizes = [2, 8, 8], strides = [1, 1, 1]} : vector<2x8x96xf32> to vector<2x8x8xf32>
    %67 = vector.extract_strided_slice %13 {offsets = [0, 0, 80], sizes = [2, 8, 8], strides = [1, 1, 1]} : vector<2x8x96xf32> to vector<2x8x8xf32>
    %68 = arith.truncf %65 : vector<2x8x8xf32> to vector<2x8x8xbf16>
    %69 = arith.truncf %66 : vector<2x8x8xf32> to vector<2x8x8xbf16>
    "tpu.trace_start"() <{level = 10 : i32, message = "bqd,bkd->bqk"}> : () -> ()
    %cst_27 = arith.constant dense<0.000000e+00> : vector<2x8x8xf32>
    %70 = tpu.matmul %68, %69, %cst_27 {dimension_numbers = #tpu.dot_dimension_numbers<[2], [2], [1], [1], [0, 0, 0, 1, 1, 1], [0], [0]>} : vector<2x8x8xbf16>, vector<2x8x8xbf16>, vector<2x8x8xf32> -> vector<2x8x8xf32>
    "tpu.trace_stop"() : () -> ()
    %cst_28 = arith.constant 0.353553385 : f32
    %71 = vector.broadcast %cst_28 : f32 to vector<2x8x8xf32>
    %72 = arith.mulf %70, %71 : vector<2x8x8xf32>
    %73 = vector.broadcast %14 : vector<2x1x8xf32> to vector<2x8x8xf32>
    %74 = arith.addf %72, %73 : vector<2x8x8xf32>
    %cst_29 = arith.constant dense<0xFF800000> : vector<2x8xf32>
    %75 = vector.multi_reduction <maximumf>, %74, %cst_29 [2] : vector<2x8x8xf32> to vector<2x8xf32>
    %76 = vector.shape_cast %75 : vector<2x8xf32> to vector<2x8x1xf32>
    %77 = vector.broadcast %76 : vector<2x8x1xf32> to vector<2x8x8xf32>
    %78 = arith.subf %74, %77 : vector<2x8x8xf32>
    %79 = math.exp %78 : vector<2x8x8xf32>
    %cst_30 = arith.constant dense<0.000000e+00> : vector<2x8xf32>
    %80 = vector.multi_reduction <add>, %79, %cst_30 [2] : vector<2x8x8xf32> to vector<2x8xf32>
    %81 = vector.shape_cast %80 : vector<2x8xf32> to vector<2x8x1xf32>
    %82 = tpu.reciprocal %81 {approx = true} : vector<2x8x1xf32> -> vector<2x8x1xf32>
    %83 = vector.broadcast %82 : vector<2x8x1xf32> to vector<2x8x8xf32>
    %84 = arith.mulf %79, %83 : vector<2x8x8xf32>
    %85 = arith.truncf %84 : vector<2x8x8xf32> to vector<2x8x8xbf16>
    %86 = arith.truncf %67 : vector<2x8x8xf32> to vector<2x8x8xbf16>
    "tpu.trace_start"() <{level = 10 : i32, message = "bqk,bkd->bqd"}> : () -> ()
    %cst_31 = arith.constant dense<0.000000e+00> : vector<2x8x8xf32>
    %87 = tpu.matmul %85, %86, %cst_31 {dimension_numbers = #tpu.dot_dimension_numbers<[2], [1], [1], [2], [0, 0, 0, 1, 1, 2], [0], [0]>} : vector<2x8x8xbf16>, vector<2x8x8xbf16>, vector<2x8x8xf32> -> vector<2x8x8xf32>
    "tpu.trace_stop"() : () -> ()
    %88 = arith.truncf %87 : vector<2x8x8xf32> to vector<2x8x8xbf16>
    %c0_32 = arith.constant 0 : index
    %c0_33 = arith.constant 0 : index
    %c16 = arith.constant 16 : index
    %89 = vector.load %arg17[%c0_32, %c0_33, %c16] : memref<2x8x32xbf16, #tpu.memory_space<vmem>>, vector<2x8x8xbf16>
    tpu.vector_store %arg17[%c0_32, %c0_33, %c16], %88 {strides = array<i32>} : memref<2x8x32xbf16, #tpu.memory_space<vmem>>, vector<2x8x8xbf16>,
    %90 = vector.extract_strided_slice %13 {offsets = [0, 0, 24], sizes = [2, 8, 8], strides = [1, 1, 1]} : vector<2x8x96xf32> to vector<2x8x8xf32>
    %91 = vector.extract_strided_slice %13 {offsets = [0, 0, 56], sizes = [2, 8, 8], strides = [1, 1, 1]} : vector<2x8x96xf32> to vector<2x8x8xf32>
    %92 = vector.extract_strided_slice %13 {offsets = [0, 0, 88], sizes = [2, 8, 8], strides = [1, 1, 1]} : vector<2x8x96xf32> to vector<2x8x8xf32>
    %93 = arith.truncf %90 : vector<2x8x8xf32> to vector<2x8x8xbf16>
    %94 = arith.truncf %91 : vector<2x8x8xf32> to vector<2x8x8xbf16>
    "tpu.trace_start"() <{level = 10 : i32, message = "bqd,bkd->bqk"}> : () -> ()
    %cst_34 = arith.constant dense<0.000000e+00> : vector<2x8x8xf32>
    %95 = tpu.matmul %93, %94, %cst_34 {dimension_numbers = #tpu.dot_dimension_numbers<[2], [2], [1], [1], [0, 0, 0, 1, 1, 1], [0], [0]>} : vector<2x8x8xbf16>, vector<2x8x8xbf16>, vector<2x8x8xf32> -> vector<2x8x8xf32>
    "tpu.trace_stop"() : () -> ()
    %cst_35 = arith.constant 0.353553385 : f32
    %96 = vector.broadcast %cst_35 : f32 to vector<2x8x8xf32>
    %97 = arith.mulf %95, %96 : vector<2x8x8xf32>
    %98 = vector.broadcast %14 : vector<2x1x8xf32> to vector<2x8x8xf32>
    %99 = arith.addf %97, %98 : vector<2x8x8xf32>
    %cst_36 = arith.constant dense<0xFF800000> : vector<2x8xf32>
    %100 = vector.multi_reduction <maximumf>, %99, %cst_36 [2] : vector<2x8x8xf32> to vector<2x8xf32>
    %101 = vector.shape_cast %100 : vector<2x8xf32> to vector<2x8x1xf32>
    %102 = vector.broadcast %101 : vector<2x8x1xf32> to vector<2x8x8xf32>
    %103 = arith.subf %99, %102 : vector<2x8x8xf32>
    %104 = math.exp %103 : vector<2x8x8xf32>
    %cst_37 = arith.constant dense<0.000000e+00> : vector<2x8xf32>
    %105 = vector.multi_reduction <add>, %104, %cst_37 [2] : vector<2x8x8xf32> to vector<2x8xf32>
    %106 = vector.shape_cast %105 : vector<2x8xf32> to vector<2x8x1xf32>
    %107 = tpu.reciprocal %106 {approx = true} : vector<2x8x1xf32> -> vector<2x8x1xf32>
    %108 = vector.broadcast %107 : vector<2x8x1xf32> to vector<2x8x8xf32>
    %109 = arith.mulf %104, %108 : vector<2x8x8xf32>
    %110 = arith.truncf %109 : vector<2x8x8xf32> to vector<2x8x8xbf16>
    %111 = arith.truncf %92 : vector<2x8x8xf32> to vector<2x8x8xbf16>
    "tpu.trace_start"() <{level = 10 : i32, message = "bqk,bkd->bqd"}> : () -> ()
    %cst_38 = arith.constant dense<0.000000e+00> : vector<2x8x8xf32>
    %112 = tpu.matmul %110, %111, %cst_38 {dimension_numbers = #tpu.dot_dimension_numbers<[2], [1], [1], [2], [0, 0, 0, 1, 1, 2], [0], [0]>} : vector<2x8x8xbf16>, vector<2x8x8xbf16>, vector<2x8x8xf32> -> vector<2x8x8xf32>
    "tpu.trace_stop"() : () -> ()
    %113 = arith.truncf %112 : vector<2x8x8xf32> to vector<2x8x8xbf16>
    %c0_39 = arith.constant 0 : index
    %c0_40 = arith.constant 0 : index
    %c24 = arith.constant 24 : index
    %114 = vector.load %arg17[%c0_39, %c0_40, %c24] : memref<2x8x32xbf16, #tpu.memory_space<vmem>>, vector<2x8x8xbf16>
    tpu.vector_store %arg17[%c0_39, %c0_40, %c24], %113 {strides = array<i32>} : memref<2x8x32xbf16, #tpu.memory_space<vmem>>, vector<2x8x8xbf16>,
    %c0_41 = arith.constant 0 : index
    %c0_42 = arith.constant 0 : index
    %c0_43 = arith.constant 0 : index
    %115 = vector.load %arg17[%c0_41, %c0_42, %c0_43] : memref<2x8x32xbf16, #tpu.memory_space<vmem>>, vector<2x8x32xbf16>
    %116 = vector.shape_cast %115 : vector<2x8x32xbf16> to vector<16x32xbf16>
    %c0_44 = arith.constant 0 : index
    %c0_45 = arith.constant 0 : index
    %c0_46 = arith.constant 0 : index
    %117 = vector.load %arg6[%c0_44, %c0_45, %c0_46] : memref<1x32x32xbf16, #tpu.memory_space<vmem>>, vector<1x32x32xbf16>
    %118 = vector.shape_cast %117 : vector<1x32x32xbf16> to vector<32x32xbf16>
    %cst_47 = arith.constant dense<0.000000e+00> : vector<16x32xf32>
    %119 = tpu.matmul %116, %118, %cst_47 {dimension_numbers = #tpu.dot_dimension_numbers<[1], [0], [0], [1], [0, 0, 1, 1], [], []>} : vector<16x32xbf16>, vector<32x32xbf16>, vector<16x32xf32> -> vector<16x32xf32>
    %c0_48 = arith.constant 0 : index
    %c0_49 = arith.constant 0 : index
    %c0_50 = arith.constant 0 : index
    %120 = vector.load %arg7[%c0_48, %c0_49, %c0_50] : memref<1x1x32xf32, #tpu.memory_space<vmem>>, vector<1x1x32xf32>
    %121 = vector.shape_cast %120 : vector<1x1x32xf32> to vector<1x32xf32>
    %122 = vector.broadcast %121 : vector<1x32xf32> to vector<16x32xf32>
    %123 = arith.addf %119, %122 : vector<16x32xf32>
    %124 = vector.shape_cast %123 : vector<16x32xf32> to vector<2x8x32xf32>
    %125 = arith.addf %124, %3 : vector<2x8x32xf32>
    %c0_51 = arith.constant 0 : index
    %c0_52 = arith.constant 0 : index
    %c0_53 = arith.constant 0 : index
    %126 = vector.load %arg8[%c0_51, %c0_52, %c0_53] : memref<1x1x32xf32, #tpu.memory_space<vmem>>, vector<1x1x32xf32>
    %127 = vector.shape_cast %126 : vector<1x1x32xf32> to vector<1x32xf32>
    %c0_54 = arith.constant 0 : index
    %c0_55 = arith.constant 0 : index
    %c0_56 = arith.constant 0 : index
    %128 = vector.load %arg9[%c0_54, %c0_55, %c0_56] : memref<1x1x32xf32, #tpu.memory_space<vmem>>, vector<1x1x32xf32>
    %129 = vector.shape_cast %128 : vector<1x1x32xf32> to vector<1x32xf32>
    %cst_57 = arith.constant dense<0.000000e+00> : vector<2x8xf32>
    %130 = vector.multi_reduction <add>, %125, %cst_57 [2] : vector<2x8x32xf32> to vector<2x8xf32>
    %131 = vector.shape_cast %130 : vector<2x8xf32> to vector<2x8x1xf32>
    %cst_58 = arith.constant 3.200000e+01 : f32
    %132 = vector.broadcast %cst_58 : f32 to vector<2x8x1xf32>
    %133 = arith.divf %131, %132 : vector<2x8x1xf32>
    %134 = vector.broadcast %133 : vector<2x8x1xf32> to vector<2x8x32xf32>
    %135 = arith.subf %125, %134 : vector<2x8x32xf32>
    %136 = arith.mulf %135, %135 : vector<2x8x32xf32>
    %cst_59 = arith.constant dense<0.000000e+00> : vector<2x8xf32>
    %137 = vector.multi_reduction <add>, %136, %cst_59 [2] : vector<2x8x32xf32> to vector<2x8xf32>
    %138 = vector.shape_cast %137 : vector<2x8xf32> to vector<2x8x1xf32>
    %cst_60 = arith.constant 3.200000e+01 : f32
    %139 = vector.broadcast %cst_60 : f32 to vector<2x8x1xf32>
    %140 = arith.divf %138, %139 : vector<2x8x1xf32>
    %cst_61 = arith.constant 9.99999996E-13 : f32
    %141 = vector.broadcast %cst_61 : f32 to vector<2x8x1xf32>
    %142 = arith.addf %140, %141 : vector<2x8x1xf32>
    %143 = math.rsqrt %142 : vector<2x8x1xf32>
    %144 = vector.broadcast %143 : vector<2x8x1xf32> to vector<2x8x32xf32>
    %145 = arith.mulf %135, %144 : vector<2x8x32xf32>
    %146 = vector.shape_cast %127 : vector<1x32xf32> to vector<1x1x32xf32>
    %147 = vector.broadcast %146 : vector<1x1x32xf32> to vector<2x8x32xf32>
    %148 = arith.mulf %145, %147 : vector<2x8x32xf32>
    %149 = vector.shape_cast %129 : vector<1x32xf32> to vector<1x1x32xf32>
    %150 = vector.broadcast %149 : vector<1x1x32xf32> to vector<2x8x32xf32>
    %151 = arith.addf %148, %150 : vector<2x8x32xf32>
    %152 = vector.shape_cast %151 : vector<2x8x32xf32> to vector<16x32xf32>
    %153 = arith.truncf %152 : vector<16x32xf32> to vector<16x32xbf16>
    %c0_62 = arith.constant 0 : index
    %c0_63 = arith.constant 0 : index
    %c0_64 = arith.constant 0 : index
    %154 = vector.load %arg10[%c0_62, %c0_63, %c0_64] : memref<1x32x64xbf16, #tpu.memory_space<vmem>>, vector<1x32x64xbf16>
    %155 = vector.shape_cast %154 : vector<1x32x64xbf16> to vector<32x64xbf16>
    %cst_65 = arith.constant dense<0.000000e+00> : vector<16x64xf32>
    %156 = tpu.matmul %153, %155, %cst_65 {dimension_numbers = #tpu.dot_dimension_numbers<[1], [0], [0], [1], [0, 0, 1, 1], [], []>} : vector<16x32xbf16>, vector<32x64xbf16>, vector<16x64xf32> -> vector<16x64xf32>
    %c0_66 = arith.constant 0 : index
    %c0_67 = arith.constant 0 : index
    %c0_68 = arith.constant 0 : index
    %157 = vector.load %arg11[%c0_66, %c0_67, %c0_68] : memref<1x1x64xf32, #tpu.memory_space<vmem>>, vector<1x1x64xf32>
    %158 = vector.shape_cast %157 : vector<1x1x64xf32> to vector<1x64xf32>
    %159 = vector.broadcast %158 : vector<1x64xf32> to vector<16x64xf32>
    %160 = arith.addf %156, %159 : vector<16x64xf32>
    %cst_69 = arith.constant 5.000000e-01 : f32
    %161 = vector.broadcast %cst_69 : f32 to vector<16x64xf32>
    %162 = arith.mulf %161, %160 : vector<16x64xf32>
    %cst_70 = arith.constant 4.471500e-02 : f32
    %163 = vector.broadcast %cst_70 : f32 to vector<16x64xf32>
    %164 = arith.mulf %163, %160 : vector<16x64xf32>
    %165 = arith.mulf %164, %160 : vector<16x64xf32>
    %166 = arith.mulf %165, %160 : vector<16x64xf32>
    %167 = arith.addf %160, %166 : vector<16x64xf32>
    %cst_71 = arith.constant 0.797884583 : f32
    %168 = vector.broadcast %cst_71 : f32 to vector<16x64xf32>
    %169 = arith.mulf %168, %167 : vector<16x64xf32>
    %170 = math.tanh %169 : vector<16x64xf32>
    %cst_72 = arith.constant 1.000000e+00 : f32
    %171 = vector.broadcast %cst_72 : f32 to vector<16x64xf32>
    %172 = arith.addf %171, %170 : vector<16x64xf32>
    %173 = arith.mulf %162, %172 : vector<16x64xf32>
    %174 = arith.truncf %173 : vector<16x64xf32> to vector<16x64xbf16>
    %c0_73 = arith.constant 0 : index
    %c0_74 = arith.constant 0 : index
    %c0_75 = arith.constant 0 : index
    %175 = vector.load %arg12[%c0_73, %c0_74, %c0_75] : memref<1x64x32xbf16, #tpu.memory_space<vmem>>, vector<1x64x32xbf16>
    %176 = vector.shape_cast %175 : vector<1x64x32xbf16> to vector<64x32xbf16>
    %cst_76 = arith.constant dense<0.000000e+00> : vector<16x32xf32>
    %177 = tpu.matmul %174, %176, %cst_76 {dimension_numbers = #tpu.dot_dimension_numbers<[1], [0], [0], [1], [0, 0, 1, 1], [], []>} : vector<16x64xbf16>, vector<64x32xbf16>, vector<16x32xf32> -> vector<16x32xf32>
    %c0_77 = arith.constant 0 : index
    %c0_78 = arith.constant 0 : index
    %c0_79 = arith.constant 0 : index
    %178 = vector.load %arg13[%c0_77, %c0_78, %c0_79] : memref<1x1x32xf32, #tpu.memory_space<vmem>>, vector<1x1x32xf32>
    %179 = vector.shape_cast %178 : vector<1x1x32xf32> to vector<1x32xf32>
    %180 = vector.broadcast %179 : vector<1x32xf32> to vector<16x32xf32>
    %181 = arith.addf %177, %180 : vector<16x32xf32>
    %182 = vector.shape_cast %181 : vector<16x32xf32> to vector<2x8x32xf32>
    %183 = arith.addf %182, %151 : vector<2x8x32xf32>
    %c0_80 = arith.constant 0 : index
    %c0_81 = arith.constant 0 : index
    %c0_82 = arith.constant 0 : index
    %184 = vector.load %arg14[%c0_80, %c0_81, %c0_82] : memref<1x1x32xf32, #tpu.memory_space<vmem>>, vector<1x1x32xf32>
    %185 = vector.shape_cast %184 : vector<1x1x32xf32> to vector<1x32xf32>
    %c0_83 = arith.constant 0 : index
    %c0_84 = arith.constant 0 : index
    %c0_85 = arith.constant 0 : index
    %186 = vector.load %arg15[%c0_83, %c0_84, %c0_85] : memref<1x1x32xf32, #tpu.memory_space<vmem>>, vector<1x1x32xf32>
    %187 = vector.shape_cast %186 : vector<1x1x32xf32> to vector<1x32xf32>
    %cst_86 = arith.constant dense<0.000000e+00> : vector<2x8xf32>
    %188 = vector.multi_reduction <add>, %183, %cst_86 [2] : vector<2x8x32xf32> to vector<2x8xf32>
    %189 = vector.shape_cast %188 : vector<2x8xf32> to vector<2x8x1xf32>
    %cst_87 = arith.constant 3.200000e+01 : f32
    %190 = vector.broadcast %cst_87 : f32 to vector<2x8x1xf32>
    %191 = arith.divf %189, %190 : vector<2x8x1xf32>
    %192 = vector.broadcast %191 : vector<2x8x1xf32> to vector<2x8x32xf32>
    %193 = arith.subf %183, %192 : vector<2x8x32xf32>
    %194 = arith.mulf %193, %193 : vector<2x8x32xf32>
    %cst_88 = arith.constant dense<0.000000e+00> : vector<2x8xf32>
    %195 = vector.multi_reduction <add>, %194, %cst_88 [2] : vector<2x8x32xf32> to vector<2x8xf32>
    %196 = vector.shape_cast %195 : vector<2x8xf32> to vector<2x8x1xf32>
    %cst_89 = arith.constant 3.200000e+01 : f32
    %197 = vector.broadcast %cst_89 : f32 to vector<2x8x1xf32>
    %198 = arith.divf %196, %197 : vector<2x8x1xf32>
    %cst_90 = arith.constant 9.99999996E-13 : f32
    %199 = vector.broadcast %cst_90 : f32 to vector<2x8x1xf32>
    %200 = arith.addf %198, %199 : vector<2x8x1xf32>
    %201 = math.rsqrt %200 : vector<2x8x1xf32>
    %202 = vector.broadcast %201 : vector<2x8x1xf32> to vector<2x8x32xf32>
    %203 = arith.mulf %193, %202 : vector<2x8x32xf32>
    %204 = vector.shape_cast %185 : vector<1x32xf32> to vector<1x1x32xf32>
    %205 = vector.broadcast %204 : vector<1x1x32xf32> to vector<2x8x32xf32>
    %206 = arith.mulf %203, %205 : vector<2x8x32xf32>
    %207 = vector.shape_cast %187 : vector<1x32xf32> to vector<1x1x32xf32>
    %208 = vector.broadcast %207 : vector<1x1x32xf32> to vector<2x8x32xf32>
    %209 = arith.addf %206, %208 : vector<2x8x32xf32>
    %c0_91 = arith.constant 0 : index
    %c0_92 = arith.constant 0 : index
    %c0_93 = arith.constant 0 : index
    %210 = vector.load %arg16[%c0_91, %c0_92, %c0_93] : memref<2x8x32xf32, #tpu.memory_space<vmem>>, vector<2x8x32xf32>
    tpu.vector_store %arg16[%c0_91, %c0_92, %c0_93], %209 {strides = array<i32>} : memref<2x8x32xf32, #tpu.memory_space<vmem>>, vector<2x8x32xf32>,
    return
  }
  func.func @transform_0(%arg0: i32, %arg1: i32) -> (i32, i32, i32) {
    %c0_i32 = arith.constant 0 : i32
    %c0_i32_0 = arith.constant 0 : i32
    %c0_i32_1 = arith.constant 0 : i32
    return %arg0, %c0_i32, %c0_i32_0 : i32, i32, i32
  }
  func.func @transform_1(%arg0: i32, %arg1: i32) -> (i32, i32, i32) {
    %c0_i32 = arith.constant 0 : i32
    %c0_i32_0 = arith.constant 0 : i32
    %c0_i32_1 = arith.constant 0 : i32
    return %arg0, %c0_i32, %c0_i32_0 : i32, i32, i32
  }
  func.func @transform_2(%arg0: i32, %arg1: i32) -> (i32, i32, i32) {
    %c0_i32 = arith.constant 0 : i32
    %c0_i32_0 = arith.constant 0 : i32
    %c0_i32_1 = arith.constant 0 : i32
    return %arg1, %c0_i32, %c0_i32_0 : i32, i32, i32
  }
  func.func @transform_3(%arg0: i32, %arg1: i32) -> (i32, i32, i32) {
    %c0_i32 = arith.constant 0 : i32
    %c0_i32_0 = arith.constant 0 : i32
    %c0_i32_1 = arith.constant 0 : i32
    return %arg1, %c0_i32, %c0_i32_0 : i32, i32, i32
  }
  func.func @transform_4(%arg0: i32, %arg1: i32) -> (i32, i32, i32) {
    %c0_i32 = arith.constant 0 : i32
    %c0_i32_0 = arith.constant 0 : i32
    %c0_i32_1 = arith.constant 0 : i32
    return %arg1, %c0_i32, %c0_i32_0 : i32, i32, i32
  }
  func.func @transform_5(%arg0: i32, %arg1: i32) -> (i32, i32, i32) {
    %c0_i32 = arith.constant 0 : i32
    %c0_i32_0 = arith.constant 0 : i32
    %c0_i32_1 = arith.constant 0 : i32
    return %arg1, %c0_i32, %c0_i32_0 : i32, i32, i32
  }
  func.func @transform_6(%arg0: i32, %arg1: i32) -> (i32, i32, i32) {
    %c0_i32 = arith.constant 0 : i32
    %c0_i32_0 = arith.constant 0 : i32
    %c0_i32_1 = arith.constant 0 : i32
    return %arg1, %c0_i32, %c0_i32_0 : i32, i32, i32
  }
  func.func @transform_7(%arg0: i32, %arg1: i32) -> (i32, i32, i32) {
    %c0_i32 = arith.constant 0 : i32
    %c0_i32_0 = arith.constant 0 : i32
    %c0_i32_1 = arith.constant 0 : i32
    return %arg1, %c0_i32, %c0_i32_0 : i32, i32, i32
  }
  func.func @transform_8(%arg0: i32, %arg1: i32) -> (i32, i32, i32) {
    %c0_i32 = arith.constant 0 : i32
    %c0_i32_0 = arith.constant 0 : i32
    %c0_i32_1 = arith.constant 0 : i32
    return %arg1, %c0_i32, %c0_i32_0 : i32, i32, i32
  }
  func.func @transform_9(%arg0: i32, %arg1: i32) -> (i32, i32, i32) {
    %c0_i32 = arith.constant 0 : i32
    %c0_i32_0 = arith.constant 0 : i32
    %c0_i32_1 = arith.constant 0 : i32
    return %arg1, %c0_i32, %c0_i32_0 : i32, i32, i32
  }
  func.func @transform_10(%arg0: i32, %arg1: i32) -> (i32, i32, i32) {
    %c0_i32 = arith.constant 0 : i32
    %c0_i32_0 = arith.constant 0 : i32
    %c0_i32_1 = arith.constant 0 : i32
    return %arg1, %c0_i32, %c0_i32_0 : i32, i32, i32
  }
  func.func @transform_11(%arg0: i32, %arg1: i32) -> (i32, i32, i32) {
    %c0_i32 = arith.constant 0 : i32
    %c0_i32_0 = arith.constant 0 : i32
    %c0_i32_1 = arith.constant 0 : i32
    return %arg1, %c0_i32, %c0_i32_0 : i32, i32, i32
  }
  func.func @transform_12(%arg0: i32, %arg1: i32) -> (i32, i32, i32) {
    %c0_i32 = arith.constant 0 : i32
    %c0_i32_0 = arith.constant 0 : i32
    %c0_i32_1 = arith.constant 0 : i32
    return %arg1, %c0_i32, %c0_i32_0 : i32, i32, i32
  }
  func.func @transform_13(%arg0: i32, %arg1: i32) -> (i32, i32, i32) {
    %c0_i32 = arith.constant 0 : i32
    %c0_i32_0 = arith.constant 0 : i32
    %c0_i32_1 = arith.constant 0 : i32
    return %arg1, %c0_i32, %c0_i32_0 : i32, i32, i32
  }
  func.func @transform_14(%arg0: i32, %arg1: i32) -> (i32, i32, i32) {
    %c0_i32 = arith.constant 0 : i32
    %c0_i32_0 = arith.constant 0 : i32
    %c0_i32_1 = arith.constant 0 : i32
    return %arg0, %c0_i32, %c0_i32_0 : i32, i32, i32
  }
}

</mosaic_0001>

<bundles_post_ra>
// kernel: tpu_custom_call.1
= control target key start
LH: loop header
LB: loop body
LE: loop exit
PB: predicated region body
PF: predicated region fallthrough
CT: control target
= control target key end

     0   :  { %s4472_s0 = inlined_call_operand.hbm [shape: f32[2,1,8], index: 0, kind: input, shape index: {}]   ;;  %s4473_s1 = inlined_call_operand.hbm [shape: f32[2,8,32], index: 1, kind: input, shape index: {}]   ;;  %s4474_s2 = inlined_call_operand.hbm [shape: bf16[2,32,96], index: 2, kind: input, shape index: {}]   ;;  %s4475_s3 = inlined_call_operand.hbm [shape: f32[2,1,96], index: 3, kind: input, shape index: {}]   ;;  %s4476_s4 = inlined_call_operand.hbm [shape: bf16[2,32,32], index: 4, kind: input, shape index: {}]   ;;  %s4477_s5 = inlined_call_operand.hbm [shape: f32[2,1,32], index: 5, kind: input, shape index: {}]   ;;  %s4478_s6 = inlined_call_operand.hbm [shape: f32[2,1,32], index: 6, kind: input, shape index: {}]   ;;  %s4479_s7 = inlined_call_operand.hbm [shape: f32[2,1,32], index: 7, kind: input, shape index: {}]   ;;  %s4480_s8 = inlined_call_operand.hbm [shape: bf16[2,32,64], index: 8, kind: input, shape index: {}]   ;;  %s4481_s9 = inlined_call_operand.hbm [shape: f32[2,1,64], index: 9, kind: input, shape index: {}]   ;;  %s4482_s10 = inlined_call_operand.hbm [shape: bf16[2,64,32], index: 10, kind: input, shape index: {}]   ;;  %s4483_s11 = inlined_call_operand.hbm [shape: f32[2,1,32], index: 11, kind: input, shape index: {}]   ;;  %s4484_s12 = inlined_call_operand.hbm [shape: f32[2,1,32], index: 12, kind: input, shape index: {}]   ;;  %s4485_s13 = inlined_call_operand.hbm [shape: f32[2,1,32], index: 13, kind: input, shape index: {}]   ;;  %s4486_s14 = inlined_call_operand.hbm [shape: f32[2,8,32], index: 14, kind: output, shape index: {}]  }
   0x1   :  { %4521 = sst [smem:[#allocation35_spill]] %s4472_s0 }
   0x2   :  { %4522 = sst [smem:[#allocation36_spill]] %s4473_s1 }
   0x3   :  { %4523 = sst [smem:[#allocation37_spill]] %s4474_s2 }
   0x4   :  { %4524 = sst [smem:[#allocation38_spill]] %s4475_s3 }
   0x5   :  { %4525 = sst [smem:[#allocation39_spill]] %s4476_s4 }
   0x6   :  { %4526 = sst [smem:[#allocation40_spill]] %s4484_s12 }
   0x7   :  { %4527 = sst [smem:[#allocation41_spill]] %s4485_s13 }
   0x8   :  { %4528 = sst [smem:[#allocation42_spill]] %s4486_s14 }
   0x9   :  { %19 = vsyncpa [#allocation4], 0 }
   0xa   :  { %20 = vsyncpa [#allocation7], 0 }
   0xb   :  { %21 = vsyncpa [#allocation5], 0  ;;  %s3684_s29 = smov 0   ;;  %s3686_s30 = smov 0  }
   0xc   :  { %s3688_s15 = smov 0   ;;  %s3690_s16 = smov 0  }
   0xd   :  { %s3692_s17 = smov 0   ;;  %s3694_s18 = smov 0  }
   0xe LB: > { %4529 = sst [smem:[#allocation25_spill]] %s3553_s30  ;;  %s3713_s19 = sadd.s32 4294967295, %s3569_s18   ;;  %s3569_s18 = sphi %s3694_s18, %s27_s18   ;;  %s3565_s17 = sphi %s3692_s17, %s4590_s17   ;;  %s3561_s16 = sphi %s3690_s16, %s4589_s16   ;;  %s3557_s15 = sphi %s3688_s15, %s4587_s15   ;;  %s3553_s30 = sphi %s3686_s30, %s4586_s30   ;;  %s3549_s29 = sphi %s3684_s29, %s4585_s29  }
   0xf   : > { %4530 = sst [smem:[#allocation26_spill]] %s3557_s15  ;;  %p105_p0 = scmp.ne.s32.totalorder %s3557_s15, %s3553_s30 }
  0x10   : > { %4531 = sst [smem:[#allocation27_spill]] %s3561_s16  ;;  %p106_p1 = scmp.eq.s32.totalorder %s3569_s18, 0 }
  0x11   : > { %4532 = sst [smem:[#allocation28_spill]] %s3569_s18  ;;  %p111_p2 = scmp.ne.s32.totalorder %s3553_s30, %s3549_s29 }
  0x12   : > { %4533 = sst [smem:[#allocation29_spill]] %s3713_s19  ;;  %p4490_p3 = scmp.eq.s32.totalorder %s3713_s19, 0 }
  0x13   : > { %p3721_p4 = por %p106_p1, %p105_p0  ;;  %p2578_p5 = scmp.ge.s32.totalorder %s3569_s18, 1 }
  0x14   : > { %p3728_p6 = por %p4490_p3, %p111_p2  ;;  %p434_p7 = scmp.lt.s32.totalorder %s3569_s18, 3 }
  0x15   : > { %s3571_s24 = smov [#allocation3]   ;;  %p2931_p10 = scmp.lt.s32.totalorder %s3569_s18, 2 }
  0x16   : > { %s4535_s22 = scalar_select %p3728_p6, 1, 0 }
  0x17   : > { %p3733_p8 = pnand %p2578_p5, %p434_p7  ;;  %s449_s25 = sshll.u32 %s3571_s24, 4  ;;  %s3737_s25 = int_to_ptr.vmem [resolvable:$true] %s449_s25 }
  0x18   : > { %4536 = sst [smem:[#allocation30_spill]] %s4535_s22  ;;  %s3750_s28 = sand.u32 1, %s3557_s15  }
  0x19   : > { %s4537_s23 = scalar_select %p3733_p8, 1, 0 }
  0x1a   : > { %p2885_p9 = pneg %p3733_p8  ;;  %p3754_p12 = pnand %p2931_p10, %p3721_p4 }
  0x1b   : > { %4538 = sst [smem:[#allocation31_spill]] %s4537_s23 }
  0x1c   : > { %p3744_p11 = pnand %p2885_p9, %p4490_p3  ;;  %s4542_s0 = sld [smem:[#allocation35_spill]] }
  0x1d   : > { %s4541_s29 = scalar_select %p3754_p12, 1, 0 }
  0x1e   : > { %s4539_s26 = scalar_select %p3744_p11, 1, 0 }
  0x1f   : > { %p4500_p0 = pneg %p3744_p11 }
  0x20   : > { %4540 = sst [smem:[#allocation32_spill]] %s4539_s26 }
  0x22   : > { %s3065_s14 = scalar_lea.hbm %s4542_s0, 32 }
  0x23   : > { %p3066_p13 = scmp.ne.s32.totalorder %s4542_s0, %s3065_s14  ;;  %p3072_p4 = scmp.lt.u32.totalorder %s3065_s14, %s4542_s0 }
  0x25   : > { %p3068_p1 = pnand %p4500_p0, %p3066_p13 }
  0x27   : > { %p3069_p2 = pneg %p3068_p1 }
  0x29   : > { %p3074_p5 = pnand %p3072_p4, %p3069_p2 }
  0x2b   : > { %3077 = shalt.err (!%p3074_p5)
}
  0x2c   : > { %s3078_s20 = scalar_lea.vmem %s3737_s25, 32  ;;  %p3086_p3 = scmp.lt.s32.totalorder %s3737_s25, %s3737_s25 }
  0x2d   : > { %p3079_p7 = scmp.ne.s32.totalorder %s3737_s25, %s3078_s20  ;;  %p3087_p13 = scmp.lt.s32.totalorder %s3078_s20, %s3078_s20 }
  0x2f   : > { %p3081_p9 = pnand %p3079_p7, %p4500_p0  ;;  %p3088_p1 = por %p3087_p13, %p3086_p3 }
  0x31   : > { %p3082_p10 = pneg %p3081_p9 }
  0x33   : > { %p3089_p6 = pnand %p3088_p1, %p3082_p10 }
  0x35   : > { %3092 = shalt.err (!%p3089_p6)
}
  0x36   : > { %s3572_s16 = smov 16   ;;  %s3573_s14 = smov 1  }
  0x37   : > { %2888 = dma.hbm_to_vmem [thread:$0]  (!%p3744_p11), %s4542_s0, 32, %s3737_s25, [#allocation4], %s3572_s16, %s3572_s16, %s3573_s14  }
  0x38   : > { %s3786_s24 = sshll.u32 %s3750_s28, 4  ;;  %s36_s21 = sadd.s32 1, %s3565_s17 }
  0x39   : > { %p37_p3 = scmp.ge.s32.totalorder %s36_s21, 2  ;;  %s3790_s20 = sshll.u32 %s3565_s17, 8 }
  0x3a   : > { %s4543_s2 = sld [smem:[#allocation37_spill]]  ;;  %s483_s13 = scalar_lea.vmem [#allocation8], %s3786_s24 }
  0x3b   : > { %s490_s22 = sshll.u32 %s483_s13, 4  ;;  %s4592_s21 = smov (%p37_p3, %s36_s21), 0  ;;  %s3801_s22 = int_to_ptr.vmem [resolvable:$true] %s490_s22 }
  0x3c   : > { %4544 = sst [smem:[#allocation33_spill]] %s4592_s21  ;;  %s95_s25 = ssub.s32 %s3565_s17, %s4592_s21 }
  0x3d   : > { %p3805_p6 = scmp.eq.s32.totalorder %s95_s25, 0  ;;  %s4546_s14 = sand.u32 1, %s3569_s18  }
  0x3e   : > { %s3811_s30 = scalar_lea.sflag [#allocation4], %s4546_s14  ;;  %p3817_p4 = pneg %p3754_p12 }
  0x3f   : > { %s4545_s16 = scalar_select %p3805_p6, 1, 0 }
  0x40   : > { %s3796_s23 = scalar_lea.hbm %s4543_s2, %s3790_s20  ;;  %s3098_s25 = scalar_lea.hbm %s4543_s2, 512 }
  0x41   : > { %s3093_s19 = scalar_lea.hbm %s3796_s23, 256  ;;  %p3099_p9 = scmp.lt.u32.totalorder %s3796_s23, %s4543_s2 }
  0x42   : > { %p3094_p2 = scmp.ne.s32.totalorder %s3796_s23, %s3093_s19  ;;  %p3100_p10 = scmp.lt.u32.totalorder %s3098_s25, %s3093_s19 }
  0x43   : > { %s4547_s27 = scalar_select %p3817_p4, 1, 0 }
  0x44   : > { %p3096_p5 = pnand %p3817_p4, %p3094_p2  ;;  %p3101_p13 = por %p3100_p10, %p3099_p9 }
  0x45   : > { %p3102_p1 = scmp.lt.u32.totalorder %s3093_s19, %s3796_s23 }
  0x46   : > { %p3097_p7 = pneg %p3096_p5 }
  0x47   : > { %p3103_p3 = por %p3102_p1, %p3101_p13 }
  0x49   : > { %p3104_p0 = pnand %p3103_p3, %p3097_p7 }
  0x4b   : > { %3107 = shalt.err (!%p3104_p0)
}
  0x4c   : > { %s3108_s14 = scalar_lea.vmem %s3801_s22, 256  ;;  %s3574_s0 = smov [#allocation8]  }
  0x4d   : > { %p3109_p2 = scmp.ne.s32.totalorder %s3801_s22, %s3108_s14  ;;  %s3113_s13 = sshll.u32 %s3574_s0, 4  ;;  %s3114_s13 = int_to_ptr.vmem [resolvable:$false] %s3113_s13 }
  0x4e   : > { %s3115_s1 = scalar_lea.vmem %s3114_s13, 512  ;;  %p3116_p11 = scmp.lt.s32.totalorder %s3801_s22, %s3114_s13 }
  0x4f   : > { %p3111_p5 = pnand %p3109_p2, %p3817_p4  ;;  %p3117_p6 = scmp.lt.s32.totalorder %s3115_s1, %s3108_s14 }
  0x51   : > { %p3112_p8 = pneg %p3111_p5  ;;  %p3118_p9 = por %p3117_p6, %p3116_p11 }
  0x53   : > { %p3119_p10 = pnand %p3118_p9, %p3112_p8 }
  0x55   : > { %3122 = shalt.err (!%p3119_p10)
}
  0x56   : > { %s4508_s21 = smov 64   ;;  %s4512_s19 = smov 4  }
  0x57   : > { %2895 = dma.hbm_to_vmem [thread:$0]  (!%p3754_p12), %s3796_s23, 256, %s3801_s22, %s3811_s30, %s4508_s21, %s4508_s21, %s4512_s19  }
  0x58   : > { %s4548_s25 = sadd.s32 1, %s3557_s15  ;;  %p4549_p8 = scmp.ne.s32.totalorder %s4545_s16, 0 }
  0x59   : > { %s3852_s0 = sshll.u32 %s3565_s17, 4  ;;  %s503_s13 = scalar_lea.vmem [#allocation9], %s3750_s28 }
  0x5a   : > { %s3849_s14 = scalar_select %p4549_p8, %s3557_s15, %s4548_s25  }
  0x5b   : > { %s510_s1 = sshll.u32 %s503_s13, 4  ;;  %s4551_s3 = sld [smem:[#allocation38_spill]]  ;;  %s511_s1 = int_to_ptr.vmem [resolvable:$true] %s510_s1 }
  0x5c   : > { %4550 = sst [smem:[#allocation34_spill]] %s3849_s14 }
  0x61   : > { %s508_s26 = scalar_lea.hbm %s4551_s3, %s3852_s0  ;;  %s3128_s16 = scalar_lea.hbm %s4551_s3, 32 }
  0x62   : > { %s3123_s12 = scalar_lea.hbm %s508_s26, 16  ;;  %p3129_p7 = scmp.lt.u32.totalorder %s508_s26, %s4551_s3 }
  0x63   : > { %p3124_p11 = scmp.ne.s32.totalorder %s508_s26, %s3123_s12  ;;  %p3130_p13 = scmp.lt.u32.totalorder %s3128_s16, %s3123_s12 }
  0x64   : > { %p3132_p3 = scmp.lt.u32.totalorder %s3123_s12, %s508_s26 }
  0x65   : > { %p3126_p0 = pnand %p3124_p11, %p3817_p4  ;;  %p3131_p1 = por %p3130_p13, %p3129_p7 }
  0x67   : > { %p3127_p6 = pneg %p3126_p0  ;;  %p3133_p2 = por %p3132_p3, %p3131_p1 }
  0x69   : > { %p3134_p5 = pnand %p3133_p2, %p3127_p6 }
  0x6b   : > { %3137 = shalt.err (!%p3134_p5)
}
  0x6c   : > { %s3138_s2 = scalar_lea.vmem %s511_s1, 16  ;;  %s3577_s18 = smov [#allocation9]  }
  0x6d   : > { %p3139_p9 = scmp.ne.s32.totalorder %s511_s1, %s3138_s2  ;;  %s3143_s13 = sshll.u32 %s3577_s18, 4  ;;  %s3144_s13 = int_to_ptr.vmem [resolvable:$false] %s3143_s13 }
  0x6e   : > { %s3145_s23 = scalar_lea.vmem %s3144_s13, 32  ;;  %p3146_p11 = scmp.lt.s32.totalorder %s511_s1, %s3144_s13 }
  0x6f   : > { %p3141_p10 = pnand %p3139_p9, %p3817_p4  ;;  %p3147_p0 = scmp.lt.s32.totalorder %s3145_s23, %s3138_s2 }
  0x71   : > { %p3142_p8 = pneg %p3141_p10  ;;  %p3148_p12 = por %p3147_p0, %p3146_p11 }
  0x73   : > { %p3149_p7 = pnand %p3148_p12, %p3142_p8 }
  0x75   : > { %3152 = shalt.err (!%p3149_p7)
}
  0x76   : > { %p4552_p13 = scmp.ne.s32.totalorder %s4541_s29, 0  ;;  %s4553_s4 = sld [smem:[#allocation39_spill]] }
  0x77   : > { %s521_s16 = scalar_lea.vmem [#allocation10], %s3786_s24  ;;  %s3885_s13 = scalar_lea.hbm %s4477_s5, %s3852_s0 }
  0x78   : > { %2898 = dma.hbm_to_vmem [thread:$0]  (!%p4552_p13), %s508_s26, 16, %s511_s1, %s3811_s30  }
  0x79   : > { %s528_s25 = sshll.u32 %s521_s16, 4  ;;  %s3879_s25 = int_to_ptr.vmem [resolvable:$true] %s528_s25 }
  0x7c   : > { %s3876_s22 = scalar_lea.hbm %s4553_s4, %s3790_s20  ;;  %s3158_s12 = scalar_lea.hbm %s4553_s4, 512 }
  0x7d   : > { %s3153_s23 = scalar_lea.hbm %s3876_s22, 256  ;;  %p3159_p3 = scmp.lt.u32.totalorder %s3876_s22, %s4553_s4 }
  0x7e   : > { %p3154_p12 = scmp.ne.s32.totalorder %s3876_s22, %s3153_s23  ;;  %p3160_p2 = scmp.lt.u32.totalorder %s3158_s12, %s3153_s23 }
  0x7f   : > { %p3162_p9 = scmp.lt.u32.totalorder %s3153_s23, %s3876_s22 }
  0x80   : > { %p3156_p6 = pnand %p3154_p12, %p3817_p4  ;;  %p3161_p5 = por %p3160_p2, %p3159_p3 }
  0x82   : > { %p3157_p1 = pneg %p3156_p6  ;;  %p3163_p10 = por %p3162_p9, %p3161_p5 }
  0x84   : > { %p3164_p8 = pnand %p3163_p10, %p3157_p1 }
  0x86   : > { %3167 = shalt.err (!%p3164_p8)
}
  0x87   : > { %s3168_s16 = scalar_lea.vmem %s3879_s25, 256  ;;  %s3578_s2 = smov [#allocation10]  }
  0x88   : > { %p3169_p11 = scmp.ne.s32.totalorder %s3879_s25, %s3168_s16  ;;  %s3173_s18 = sshll.u32 %s3578_s2, 4  ;;  %s3174_s18 = int_to_ptr.vmem [resolvable:$false] %s3173_s18 }
  0x89   : > { %s3175_s19 = scalar_lea.vmem %s3174_s18, 512  ;;  %p3176_p12 = scmp.lt.s32.totalorder %s3879_s25, %s3174_s18 }
  0x8a   : > { %p3171_p0 = pnand %p3169_p11, %p3817_p4  ;;  %p3177_p6 = scmp.lt.s32.totalorder %s3175_s19, %s3168_s16 }
  0x8c   : > { %p3172_p7 = pneg %p3171_p0  ;;  %p3178_p3 = por %p3177_p6, %p3176_p12 }
  0x8e   : > { %p3179_p2 = pnand %p3178_p3, %p3172_p7 }
  0x90   : > { %3182 = shalt.err (!%p3179_p2)
}
  0x91   : > { %s4554_s23 = smov 4   ;;  %s4555_s26 = smov 64  }
  0x92   : > { %2901 = dma.hbm_to_vmem [thread:$0]  (!%p4552_p13), %s3876_s22, 256, %s3879_s25, %s3811_s30, %s4555_s26, %s4555_s26, %s4554_s23  }
  0x93   : > { %s541_s1 = scalar_lea.vmem [#allocation11], %s3750_s28  ;;  %s3917_s2 = scalar_lea.hbm %s4478_s6, %s3852_s0 }
  0x94   : > { %s548_s12 = sshll.u32 %s541_s1, 4  ;;  %s3183_s18 = scalar_lea.hbm %s3885_s13, 16  ;;  %s549_s12 = int_to_ptr.vmem [resolvable:$true] %s548_s12 }
  0x95   : > { %p3184_p1 = scmp.ne.s32.totalorder %s3885_s13, %s3183_s18  ;;  %s3188_s4 = scalar_lea.hbm %s4477_s5, 32 }
  0x96   : > { %p3189_p10 = scmp.lt.u32.totalorder %s3885_s13, %s4477_s5  ;;  %p3190_p8 = scmp.lt.u32.totalorder %s3188_s4, %s3183_s18 }
  0x97   : > { %p3186_p5 = pnand %p3184_p1, %p3817_p4  ;;  %p3192_p0 = scmp.lt.u32.totalorder %s3183_s18, %s3885_s13 }
  0x98   : > { %p3191_p11 = por %p3190_p8, %p3189_p10 }
  0x99   : > { %p3187_p9 = pneg %p3186_p5 }
  0x9a   : > { %p3193_p7 = por %p3192_p0, %p3191_p11 }
  0x9c   : > { %p3194_p12 = pnand %p3193_p7, %p3187_p9 }
  0x9e   : > { %3197 = shalt.err (!%p3194_p12)
}
  0x9f   : > { %s3198_s22 = scalar_lea.vmem %s549_s12, 16  ;;  %s3579_s25 = smov [#allocation11]  }
  0xa0   : > { %p3199_p6 = scmp.ne.s32.totalorder %s549_s12, %s3198_s22  ;;  %s3203_s1 = sshll.u32 %s3579_s25, 4  ;;  %s3204_s1 = int_to_ptr.vmem [resolvable:$false] %s3203_s1 }
  0xa1   : > { %s3205_s3 = scalar_lea.vmem %s3204_s1, 32  ;;  %p3206_p1 = scmp.lt.s32.totalorder %s549_s12, %s3204_s1 }
  0xa2   : > { %p3201_p3 = pnand %p3199_p6, %p3817_p4  ;;  %p3207_p5 = scmp.lt.s32.totalorder %s3205_s3, %s3198_s22 }
  0xa4   : > { %p3202_p2 = pneg %p3201_p3  ;;  %p3208_p13 = por %p3207_p5, %p3206_p1 }
  0xa6   : > { %p3209_p8 = pnand %p3208_p13, %p3202_p2 }
  0xa8   : > { %3212 = shalt.err (!%p3209_p8)
}
  0xa9   : > { %p4556_p10 = scmp.ne.s32.totalorder %s4541_s29, 0  ;;  %s558_s4 = scalar_lea.vmem [#allocation12], %s3750_s28 }
  0xaa   : > { %s565_s15 = sshll.u32 %s558_s4, 4  ;;  %s3942_s16 = scalar_lea.hbm %s4479_s7, %s3852_s0  ;;  %s566_s15 = int_to_ptr.vmem [resolvable:$true] %s565_s15 }
  0xab   : > { %2904 = dma.hbm_to_vmem [thread:$0]  (!%p4556_p10), %s3885_s13, 16, %s549_s12, %s3811_s30  }
  0xac   : > { %s3213_s18 = scalar_lea.hbm %s3917_s2, 16  ;;  %s3218_s25 = scalar_lea.hbm %s4478_s6, 32 }
  0xad   : > { %p3214_p13 = scmp.ne.s32.totalorder %s3917_s2, %s3213_s18  ;;  %p3219_p0 = scmp.lt.u32.totalorder %s3917_s2, %s4478_s6 }
  0xae   : > { %p3220_p7 = scmp.lt.u32.totalorder %s3218_s25, %s3213_s18  ;;  %p3222_p6 = scmp.lt.u32.totalorder %s3213_s18, %s3917_s2 }
  0xaf   : > { %p3216_p9 = pnand %p3214_p13, %p3817_p4 }
  0xb0   : > { %p3221_p12 = por %p3220_p7, %p3219_p0 }
  0xb1   : > { %p3217_p11 = pneg %p3216_p9 }
  0xb2   : > { %p3223_p3 = por %p3222_p6, %p3221_p12 }
  0xb4   : > { %p3224_p2 = pnand %p3223_p3, %p3217_p11 }
  0xb6   : > { %3227 = shalt.err (!%p3224_p2)
}
  0xb7   : > { %s3228_s13 = scalar_lea.vmem %s566_s15, 16  ;;  %s3580_s12 = smov [#allocation12]  }
  0xb8   : > { %p3229_p1 = scmp.ne.s32.totalorder %s566_s15, %s3228_s13  ;;  %s3233_s4 = sshll.u32 %s3580_s12, 4  ;;  %s3234_s4 = int_to_ptr.vmem [resolvable:$false] %s3233_s4 }
  0xb9   : > { %s3235_s14 = scalar_lea.vmem %s3234_s4, 32  ;;  %p3236_p13 = scmp.lt.s32.totalorder %s566_s15, %s3234_s4 }
  0xba   : > { %p3231_p5 = pnand %p3229_p1, %p3817_p4  ;;  %p3237_p9 = scmp.lt.s32.totalorder %s3235_s14, %s3228_s13 }
  0xbc   : > { %p3232_p8 = pneg %p3231_p5  ;;  %p3238_p10 = por %p3237_p9, %p3236_p13 }
  0xbe   : > { %p3239_p0 = pnand %p3238_p10, %p3232_p8 }
  0xc0   : > { %3242 = shalt.err (!%p3239_p0)
}
  0xc1   : > { %p4557_p7 = scmp.ne.s32.totalorder %s4541_s29, 0  ;;  %s575_s21 = scalar_lea.vmem [#allocation13], %s3750_s28 }
  0xc2   : > { %s582_s18 = sshll.u32 %s575_s21, 4  ;;  %s3967_s25 = scalar_lea.hbm %s4480_s8, %s3790_s20  ;;  %s583_s18 = int_to_ptr.vmem [resolvable:$true] %s582_s18 }
  0xc3   : > { %2907 = dma.hbm_to_vmem [thread:$0]  (!%p4557_p7), %s3917_s2, 16, %s566_s15, %s3811_s30  }
  0xc4   : > { %s3243_s1 = scalar_lea.hbm %s3942_s16, 16  ;;  %s3248_s12 = scalar_lea.hbm %s4479_s7, 32 }
  0xc5   : > { %p3244_p10 = scmp.ne.s32.totalorder %s3942_s16, %s3243_s1  ;;  %p3249_p6 = scmp.lt.u32.totalorder %s3942_s16, %s4479_s7 }
  0xc6   : > { %p3250_p3 = scmp.lt.u32.totalorder %s3248_s12, %s3243_s1  ;;  %p3252_p1 = scmp.lt.u32.totalorder %s3243_s1, %s3942_s16 }
  0xc7   : > { %p3246_p11 = pnand %p3244_p10, %p3817_p4 }
  0xc8   : > { %p3251_p2 = por %p3250_p3, %p3249_p6 }
  0xc9   : > { %p3247_p12 = pneg %p3246_p11 }
  0xca   : > { %p3253_p5 = por %p3252_p1, %p3251_p2 }
  0xcc   : > { %p3254_p8 = pnand %p3253_p5, %p3247_p12 }
  0xce   : > { %3257 = shalt.err (!%p3254_p8)
}
  0xcf   : > { %s3258_s20 = scalar_lea.vmem %s583_s18, 16  ;;  %s3581_s2 = smov [#allocation13]  }
  0xd0   : > { %p3259_p13 = scmp.ne.s32.totalorder %s583_s18, %s3258_s20  ;;  %s3263_s15 = sshll.u32 %s3581_s2, 4  ;;  %s3264_s15 = int_to_ptr.vmem [resolvable:$false] %s3263_s15 }
  0xd1   : > { %s3265_s21 = scalar_lea.vmem %s3264_s15, 32  ;;  %p3266_p10 = scmp.lt.s32.totalorder %s583_s18, %s3264_s15 }
  0xd2   : > { %p3261_p9 = pnand %p3259_p13, %p3817_p4  ;;  %p3267_p11 = scmp.lt.s32.totalorder %s3265_s21, %s3258_s20 }
  0xd4   : > { %p3262_p0 = pneg %p3261_p9  ;;  %p3268_p7 = por %p3267_p11, %p3266_p10 }
  0xd6   : > { %p3269_p3 = pnand %p3268_p7, %p3262_p0 }
  0xd8   : > { %3272 = shalt.err (!%p3269_p3)
}
  0xd9   : > { %p4558_p6 = scmp.ne.s32.totalorder %s4541_s29, 0  ;;  %s593_s19 = scalar_lea.vmem [#allocation14], %s3786_s24 }
  0xda   : > { %s600_s22 = sshll.u32 %s593_s19, 4  ;;  %s3994_s13 = scalar_lea.hbm %s4481_s9, %s3852_s0  ;;  %s3988_s22 = int_to_ptr.vmem [resolvable:$true] %s600_s22 }
  0xdb   : > { %2910 = dma.hbm_to_vmem [thread:$0]  (!%p4558_p6), %s3942_s16, 16, %s583_s18, %s3811_s30  }
  0xdc   : > { %s3273_s12 = scalar_lea.hbm %s3967_s25, 256  ;;  %s3278_s20 = scalar_lea.hbm %s4480_s8, 512 }
  0xdd   : > { %p3274_p7 = scmp.ne.s32.totalorder %s3967_s25, %s3273_s12  ;;  %p3279_p1 = scmp.lt.u32.totalorder %s3967_s25, %s4480_s8 }
  0xde   : > { %p3280_p5 = scmp.lt.u32.totalorder %s3278_s20, %s3273_s12  ;;  %p3282_p13 = scmp.lt.u32.totalorder %s3273_s12, %s3967_s25 }
  0xdf   : > { %p3276_p12 = pnand %p3274_p7, %p3817_p4 }
  0xe0   : > { %p3281_p8 = por %p3280_p5, %p3279_p1 }
  0xe1   : > { %p3277_p2 = pneg %p3276_p12 }
  0xe2   : > { %p3283_p9 = por %p3282_p13, %p3281_p8 }
  0xe4   : > { %p3284_p0 = pnand %p3283_p9, %p3277_p2 }
  0xe6   : > { %3287 = shalt.err (!%p3284_p0)
}
  0xe7   : > { %s3288_s24 = scalar_lea.vmem %s3988_s22, 256  ;;  %s3582_s18 = smov [#allocation14]  }
  0xe8   : > { %p3289_p10 = scmp.ne.s32.totalorder %s3988_s22, %s3288_s24  ;;  %s3293_s15 = sshll.u32 %s3582_s18, 4  ;;  %s3294_s15 = int_to_ptr.vmem [resolvable:$false] %s3293_s15 }
  0xe9   : > { %s3295_s21 = scalar_lea.vmem %s3294_s15, 512  ;;  %p3296_p7 = scmp.lt.s32.totalorder %s3988_s22, %s3294_s15 }
  0xea   : > { %p3291_p11 = pnand %p3289_p10, %p3817_p4  ;;  %p3297_p12 = scmp.lt.s32.totalorder %s3295_s21, %s3288_s24 }
  0xec   : > { %p3292_p3 = pneg %p3291_p11  ;;  %p3298_p1 = por %p3297_p12, %p3296_p7 }
  0xee   : > { %p3299_p5 = pnand %p3298_p1, %p3292_p3 }
  0xf0   : > { %3302 = shalt.err (!%p3299_p5)
}
  0xf1   : > { %2913 = dma.hbm_to_vmem [thread:$0]  (!%p4558_p6), %s3967_s25, 256, %s3988_s22, %s3811_s30, %s4555_s26, %s4555_s26, %s4554_s23  }
  0xf2   : > { %s613_s19 = scalar_lea.vmem [#allocation15], %s3750_s28  ;;  %s2596_s3 = sshll.u32 %s3750_s28, 5 }
  0xf3   : > { %s620_s1 = sshll.u32 %s613_s19, 4  ;;  %s3303_s12 = scalar_lea.hbm %s3994_s13, 16  ;;  %s621_s1 = int_to_ptr.vmem [resolvable:$true] %s620_s1 }
  0xf4   : > { %p3304_p2 = scmp.ne.s32.totalorder %s3994_s13, %s3303_s12  ;;  %s3308_s20 = scalar_lea.hbm %s4481_s9, 32 }
  0xf5   : > { %p3309_p9 = scmp.lt.u32.totalorder %s3994_s13, %s4481_s9  ;;  %p3310_p0 = scmp.lt.u32.totalorder %s3308_s20, %s3303_s12 }
  0xf6   : > { %p3306_p8 = pnand %p3304_p2, %p3817_p4  ;;  %p3312_p11 = scmp.lt.u32.totalorder %s3303_s12, %s3994_s13 }
  0xf7   : > { %p3311_p10 = por %p3310_p0, %p3309_p9 }
  0xf8   : > { %p3307_p13 = pneg %p3306_p8 }
  0xf9   : > { %p3313_p3 = por %p3312_p11, %p3311_p10 }
  0xfb   : > { %p3314_p7 = pnand %p3313_p3, %p3307_p13 }
  0xfd   : > { %3317 = shalt.err (!%p3314_p7)
}
  0xfe   : > { %s3318_s25 = scalar_lea.vmem %s621_s1, 16  ;;  %s3583_s22 = smov [#allocation15]  }
  0xff   : > { %p3319_p12 = scmp.ne.s32.totalorder %s621_s1, %s3318_s25  ;;  %s3323_s24 = sshll.u32 %s3583_s22, 4  ;;  %s3324_s24 = int_to_ptr.vmem [resolvable:$false] %s3323_s24 }
 0x100   : > { %s3325_s18 = scalar_lea.vmem %s3324_s24, 32  ;;  %p3326_p2 = scmp.lt.s32.totalorder %s621_s1, %s3324_s24 }
 0x101   : > { %p3321_p1 = pnand %p3319_p12, %p3817_p4  ;;  %p3327_p8 = scmp.lt.s32.totalorder %s3325_s18, %s3318_s25 }
 0x103   : > { %p3322_p5 = pneg %p3321_p1  ;;  %p3328_p6 = por %p3327_p8, %p3326_p2 }
 0x105   : > { %p3329_p0 = pnand %p3328_p6, %p3322_p5 }
 0x107   : > { %3332 = shalt.err (!%p3329_p0)
}
 0x108   : > { %p4559_p9 = scmp.ne.s32.totalorder %s4541_s29, 0  ;;  %s2664_s15 = sshll.u32 %s3565_s17, 9 }
 0x109   : > { %s631_s21 = scalar_lea.vmem [#allocation16], %s2596_s3  ;;  %s4047_s14 = scalar_lea.hbm %s4482_s10, %s2664_s15 }
 0x10a   : > { %2916 = dma.hbm_to_vmem [thread:$0]  (!%p4559_p9), %s3994_s13, 16, %s621_s1, %s3811_s30  }
 0x10b   : > { %s638_s19 = sshll.u32 %s631_s21, 4  ;;  %s3333_s20 = scalar_lea.hbm %s4047_s14, 512  ;;  %s4049_s19 = int_to_ptr.vmem [resolvable:$true] %s638_s19 }
 0x10c   : > { %p3334_p6 = scmp.ne.s32.totalorder %s4047_s14, %s3333_s20  ;;  %s3338_s3 = scalar_lea.hbm %s4482_s10, 1024 }
 0x10d   : > { %p3339_p11 = scmp.lt.u32.totalorder %s4047_s14, %s4482_s10  ;;  %p3340_p3 = scmp.lt.u32.totalorder %s3338_s3, %s3333_s20 }
 0x10e   : > { %p3336_p13 = pnand %p3334_p6, %p3817_p4  ;;  %p3342_p12 = scmp.lt.u32.totalorder %s3333_s20, %s4047_s14 }
 0x10f   : > { %p3341_p7 = por %p3340_p3, %p3339_p11 }
 0x110   : > { %p3337_p10 = pneg %p3336_p13 }
 0x111   : > { %p3343_p1 = por %p3342_p12, %p3341_p7 }
 0x113   : > { %p3344_p5 = pnand %p3343_p1, %p3337_p10 }
 0x115   : > { %3347 = shalt.err (!%p3344_p5)
}
 0x116   : > { %s3348_s25 = scalar_lea.vmem %s4049_s19, 512  ;;  %s3584_s22 = smov [#allocation16]  }
 0x117   : > { %p3349_p2 = scmp.ne.s32.totalorder %s4049_s19, %s3348_s25  ;;  %s3353_s24 = sshll.u32 %s3584_s22, 4  ;;  %s3354_s24 = int_to_ptr.vmem [resolvable:$false] %s3353_s24 }
 0x118   : > { %s3355_s18 = scalar_lea.vmem %s3354_s24, 1024  ;;  %p3356_p6 = scmp.lt.s32.totalorder %s4049_s19, %s3354_s24 }
 0x119   : > { %p3351_p8 = pnand %p3349_p2, %p3817_p4  ;;  %p3357_p13 = scmp.lt.s32.totalorder %s3355_s18, %s3348_s25 }
 0x11b   : > { %p3352_p0 = pneg %p3351_p8  ;;  %p3358_p11 = por %p3357_p13, %p3356_p6 }
 0x11d   : > { %p3359_p3 = pnand %p3358_p11, %p3352_p0 }
 0x11f   : > { %3362 = shalt.err (!%p3359_p3)
}
 0x120   : > { %2919 = dma.hbm_to_vmem [thread:$0]  (!%p4559_p9), %s4047_s14, 512, %s4049_s19, %s3811_s30, %s4555_s26, %s4555_s26, %s4554_s23  }
 0x121   : > { %s4080_s12 = scalar_lea.hbm %s4483_s11, %s3852_s0  ;;  %s651_s4 = scalar_lea.vmem [#allocation17], %s3750_s28 }
 0x122   : > { %s658_s20 = sshll.u32 %s651_s4, 4  ;;  %s4560_s3 = sld [smem:[#allocation40_spill]]  ;;  %s659_s20 = int_to_ptr.vmem [resolvable:$true] %s658_s20 }
 0x123   : > { %s3363_s16 = scalar_lea.hbm %s4080_s12, 16  ;;  %s3368_s19 = scalar_lea.hbm %s4483_s11, 32 }
 0x124   : > { %p3364_p10 = scmp.ne.s32.totalorder %s4080_s12, %s3363_s16  ;;  %p3369_p1 = scmp.lt.u32.totalorder %s4080_s12, %s4483_s11 }
 0x125   : > { %p3370_p5 = scmp.lt.u32.totalorder %s3368_s19, %s3363_s16  ;;  %p3372_p8 = scmp.lt.u32.totalorder %s3363_s16, %s4080_s12 }
 0x126   : > { %p3366_p7 = pnand %p3364_p10, %p3817_p4 }
 0x127   : > { %p3371_p2 = por %p3370_p5, %p3369_p1 }
 0x128   : > { %s4087_s2 = scalar_lea.hbm %s4560_s3, %s3852_s0  ;;  %p3367_p12 = pneg %p3366_p7 }
 0x129   : > { %p3373_p0 = por %p3372_p8, %p3371_p2 }
 0x12b   : > { %p3374_p6 = pnand %p3373_p0, %p3367_p12 }
 0x12d   : > { %3377 = shalt.err (!%p3374_p6)
}
 0x12e   : > { %s3378_s22 = scalar_lea.vmem %s659_s20, 16  ;;  %s3585_s24 = smov [#allocation17]  }
 0x12f   : > { %p3379_p13 = scmp.ne.s32.totalorder %s659_s20, %s3378_s22  ;;  %s3383_s18 = sshll.u32 %s3585_s24, 4  ;;  %s3384_s18 = int_to_ptr.vmem [resolvable:$false] %s3383_s18 }
 0x130   : > { %s3385_s15 = scalar_lea.vmem %s3384_s18, 32  ;;  %p3386_p10 = scmp.lt.s32.totalorder %s659_s20, %s3384_s18 }
 0x131   : > { %p3381_p11 = pnand %p3379_p13, %p3817_p4  ;;  %p3387_p7 = scmp.lt.s32.totalorder %s3385_s15, %s3378_s22 }
 0x133   : > { %p3382_p3 = pneg %p3381_p11  ;;  %p3388_p9 = por %p3387_p7, %p3386_p10 }
 0x135   : > { %p3389_p1 = pnand %p3388_p9, %p3382_p3 }
 0x137   : > { %3392 = shalt.err (!%p3389_p1)
}
 0x138   : > { %p4561_p5 = scmp.ne.s32.totalorder %s4541_s29, 0  ;;  %s668_s21 = scalar_lea.vmem [#allocation18], %s3750_s28 }
 0x139   : > { %s675_s4 = sshll.u32 %s668_s21, 4  ;;  %s3586_s13 = smov [#allocation6]   ;;  %s4108_s4 = int_to_ptr.vmem [resolvable:$true] %s675_s4 }
 0x13a   : > { %2922 = dma.hbm_to_vmem [thread:$0]  (!%p4561_p5), %s4080_s12, 16, %s659_s20, %s3811_s30  }
 0x13b   : > { %s465_s1 = sshll.u32 %s3586_s13, 4  ;;  %s3393_s16 = scalar_lea.hbm %s4087_s2, 16  ;;  %s466_s1 = int_to_ptr.vmem [resolvable:$true] %s465_s1 }
 0x13c   : > { %p3394_p9 = scmp.ne.s32.totalorder %s4087_s2, %s3393_s16  ;;  %s3398_s19 = scalar_lea.hbm %s4560_s3, 32 }
 0x13d   : > { %p3399_p8 = scmp.lt.u32.totalorder %s4087_s2, %s4560_s3  ;;  %p3400_p0 = scmp.lt.u32.totalorder %s3398_s19, %s3393_s16 }
 0x13e   : > { %p3396_p12 = pnand %p3394_p9, %p3817_p4  ;;  %p3402_p13 = scmp.lt.u32.totalorder %s3393_s16, %s4087_s2 }
 0x13f   : > { %p3401_p6 = por %p3400_p0, %p3399_p8 }
 0x140   : > { %p3397_p2 = pneg %p3396_p12 }
 0x141   : > { %p3403_p11 = por %p3402_p13, %p3401_p6 }
 0x143   : > { %p3404_p3 = pnand %p3403_p11, %p3397_p2 }
 0x145   : > { %3407 = shalt.err (!%p3404_p3)
}
 0x146   : > { %s3408_s12 = scalar_lea.vmem %s4108_s4, 16  ;;  %s3587_s20 = smov [#allocation18]  }
 0x147   : > { %p3409_p10 = scmp.ne.s32.totalorder %s4108_s4, %s3408_s12  ;;  %s3413_s22 = sshll.u32 %s3587_s20, 4  ;;  %s3414_s22 = int_to_ptr.vmem [resolvable:$false] %s3413_s22 }
 0x148   : > { %s3415_s24 = scalar_lea.vmem %s3414_s22, 32  ;;  %p3416_p9 = scmp.lt.s32.totalorder %s4108_s4, %s3414_s22 }
 0x149   : > { %p3411_p7 = pnand %p3409_p10, %p3817_p4  ;;  %p3417_p12 = scmp.lt.s32.totalorder %s3415_s24, %s3408_s12 }
 0x14b   : > { %p3412_p1 = pneg %p3411_p7  ;;  %p3418_p8 = por %p3417_p12, %p3416_p9 }
 0x14d   : > { %p3419_p0 = pnand %p3418_p8, %p3412_p1 }
 0x14f   : > { %3422 = shalt.err (!%p3419_p0)
}
 0x150   : > { %s4562_s18 = sld [smem:[#allocation32_spill]] }
 0x151   : > { %2925 = dma.hbm_to_vmem [thread:$0]  (!%p4561_p5), %s4087_s2, 16, %s4108_s4, %s3811_s30  }
 0x152   : > { %s4563_s13 = sld [smem:[#allocation36_spill]] }
 0x156   : > { %p4564_p6 = scmp.ne.s32.totalorder %s4562_s18, 0 }
 0x158   : > { %s3423_s16 = scalar_lea.hbm %s4563_s13, 256  ;;  %p4565_p13 = pneg %p4564_p6 }
 0x159   : > { %p3424_p2 = scmp.ne.s32.totalorder %s4563_s13, %s3423_s16  ;;  %p3430_p10 = scmp.lt.u32.totalorder %s3423_s16, %s4563_s13 }
 0x15b   : > { %p3426_p11 = pnand %p3424_p2, %p4565_p13 }
 0x15d   : > { %p3427_p3 = pneg %p3426_p11 }
 0x15f   : > { %p3432_p7 = pnand %p3430_p10, %p3427_p3 }
 0x161   : > { %3435 = shalt.err (!%p3432_p7)
}
 0x162   : > { %s3436_s2 = scalar_lea.vmem %s466_s1, 256  ;;  %p4566_p9 = pmov %p4565_p13 }
 0x163   : > { %p3437_p1 = scmp.ne.s32.totalorder %s466_s1, %s3436_s2  ;;  %p3444_p0 = scmp.lt.s32.totalorder %s466_s1, %s466_s1 }
 0x164   : > { %p3445_p5 = scmp.lt.s32.totalorder %s3436_s2, %s3436_s2 }
 0x165   : > { %p3439_p12 = pnand %p3437_p1, %p4566_p9 }
 0x166   : > { %p3446_p4 = por %p3445_p5, %p3444_p0 }
 0x167   : > { %p3440_p8 = pneg %p3439_p12 }
 0x169   : > { %p3447_p2 = pnand %p3446_p4, %p3440_p8 }
 0x16b   : > { %3450 = shalt.err (!%p3447_p2)
}
 0x16c   : > { %s3588_s4 = smov 128   ;;  %s3589_s25 = smov 8  }
 0x16d   : > { %2891 = dma.hbm_to_vmem [thread:$0]  (!%p4564_p6), %s4563_s13, 256, %s466_s1, [#allocation7], %s3588_s4, %s3588_s4, %s3589_s25  }
 0x16e   : > { %s4567_s15 = sld [smem:[#allocation41_spill]]  ;;  %s685_s23 = scalar_lea.vmem [#allocation19], %s3750_s28 }
 0x16f   : > { %s692_s26 = sshll.u32 %s685_s23, 4  ;;  %p4569_p5 = scmp.ne.s32.totalorder %s4547_s27, 0  ;;  %s693_s26 = int_to_ptr.vmem [resolvable:$true] %s692_s26 }
 0x174   : > { %s4568_s21 = smov %s4567_s15  ;;  %s4156_s16 = scalar_lea.hbm %s4567_s15, %s3852_s0 }
 0x175   : > { %s3451_s19 = scalar_lea.hbm %s4156_s16, 16  ;;  %s3456_s1 = scalar_lea.hbm %s4568_s21, 32 }
 0x176   : > { %p3452_p4 = scmp.ne.s32.totalorder %s4156_s16, %s3451_s19  ;;  %p3457_p6 = scmp.lt.u32.totalorder %s4156_s16, %s4568_s21 }
 0x177   : > { %p3458_p3 = scmp.lt.u32.totalorder %s3456_s1, %s3451_s19  ;;  %p3460_p7 = scmp.lt.u32.totalorder %s3451_s19, %s4156_s16 }
 0x178   : > { %p3454_p13 = pnand %p3452_p4, %p4569_p5 }
 0x179   : > { %p3459_p10 = por %p3458_p3, %p3457_p6 }
 0x17a   : > { %p3455_p11 = pneg %p3454_p13 }
 0x17b   : > { %p3461_p1 = por %p3460_p7, %p3459_p10 }
 0x17d   : > { %p3462_p9 = pnand %p3461_p1, %p3455_p11 }
 0x17f   : > { %3465 = shalt.err (!%p3462_p9)
}
 0x180   : > { %s3466_s28 = scalar_lea.vmem %s693_s26, 16  ;;  %s3590_s0 = smov [#allocation19]  }
 0x181   : > { %p3467_p12 = scmp.ne.s32.totalorder %s693_s26, %s3466_s28  ;;  %s3471_s25 = sshll.u32 %s3590_s0, 4  ;;  %s3472_s25 = int_to_ptr.vmem [resolvable:$false] %s3471_s25 }
 0x182   : > { %s3473_s12 = scalar_lea.vmem %s3472_s25, 32  ;;  %p3474_p2 = scmp.lt.s32.totalorder %s693_s26, %s3472_s25 }
 0x183   : > { %p3469_p8 = pnand %p3467_p12, %p4569_p5  ;;  %p3475_p4 = scmp.lt.s32.totalorder %s3473_s12, %s3466_s28 }
 0x185   : > { %p3470_p0 = pneg %p3469_p8  ;;  %p3476_p13 = por %p3475_p4, %p3474_p2 }
 0x187   : > { %p3477_p3 = pnand %p3476_p13, %p3470_p0 }
 0x189   : > { %3480 = shalt.err (!%p3477_p3)
}
 0x18a   : > { %p4570_p6 = scmp.ne.s32.totalorder %s4541_s29, 0  ;;  %s4571_s20 = sld [smem:[#allocation31_spill]] }
 0x18c   : > { %2928 = dma.hbm_to_vmem [thread:$0]  (!%p4570_p6), %s4156_s16, 16, %s693_s26, %s3811_s30  }
 0x190   : > { %p4572_p11 = scmp.ne.s32.totalorder %s4571_s20, 0 }
 0x191   : > { %s4573_s27 = sld [smem:[#allocation29_spill]] (!%p4572_p11) }
 0x192   : > { %701 = sbr.rel (%p4572_p11) target bundleno = 4616 (0x1208), region = 76 }
 0x197   : > { %p4574_p5 = scmp.eq.s32.totalorder (!%p4572_p11), %s4573_s27, 0 }
 0x199   : > { %3532 = dma.done.wait (%p4574_p5), [#allocation4], 32   ;;  %p4575_p10 = pmov %p4574_p5 }
 0x19a   : > { %p4576_p7 = pmov %p4574_p5 }
 0x19b   : > { %3534 = vsyncadd (%p4575_p10), [#allocation4], 4294967264 }
 0x19c   : > { %3536 = dma.done.wait (%p4576_p7), [#allocation7], 256   ;;  %p4577_p1 = pmov %p4574_p5 }
 0x19d   : > { %s4578_s29 = sld [smem:[#allocation25_spill]]  ;;  %s4579_s22 = sld [smem:[#allocation30_spill]] }
 0x19e   : > { %3538 = vsyncadd (%p4577_p1), [#allocation7], 4294967040  ;;  %s711_s24 = sand.u32 1, %s4573_s27  }
 0x19f   : > { %s712_s16 = scalar_lea.sflag [#allocation4], %s711_s24 }
 0x1a3   : > { %s4189_s30 = sand.u32 1, %s4578_s29   ;;  %p4580_p9 = scmp.ne.s32.totalorder %s4579_s22, 0 }
 0x1a4   : > { %s4192_s15 = sshll.u32 %s4189_s30, 4 }
 0x1a5   : > { %s715_s23 = scalar_lea.vmem [#allocation8], %s4192_s15 }
 0x1a6   : > { %3540 = dma.done.wait (%p4580_p9), %s712_s16, 1408  }
 0x1a7   : > { %3542 = vsyncadd (%p4580_p9), %s712_s16, 4294965888  ;;  %s2608_s26 = sshll.u32 %s4189_s30, 5  ;;  %s723_s19 = scalar_lea.vmem [#allocation9], %s4189_s30 }
 0x1a8   : > { %s732_s18 = scalar_lea.vmem [#allocation10], %s4192_s15  ;;  %s740_s14 = scalar_lea.vmem [#allocation11], %s4189_s30 }
 0x1a9   : > { %s748_s1 = scalar_lea.vmem [#allocation12], %s4189_s30  ;;  %s756_s2 = scalar_lea.vmem [#allocation13], %s4189_s30 }
 0x1aa   : > { %s765_s4 = scalar_lea.vmem [#allocation14], %s4192_s15  ;;  %s773_s28 = scalar_lea.vmem [#allocation15], %s4189_s30 }
 0x1ab   : > { %s4207_s0 = scalar_lea.vmem [#allocation16], %s2608_s26  ;;  %s790_s25 = scalar_lea.vmem [#allocation17], %s4189_s30 }
 0x1ac   : > { %s798_s12 = scalar_lea.vmem [#allocation18], %s4189_s30  ;;  %s806_s20 = scalar_lea.vmem [#allocation19], %s4189_s30 }
 0x1ad   : > { %s4581_s27 = sld [smem:[#allocation27_spill]] }
 0x1b3   : > { %p2609_p12 = scmp.ne.s32.totalorder %s4581_s27, 0 }
 0x1b4   : > { %v901_v0 = vld [vmem:[#allocation6] sm:$0xff] (!%p2609_p12)  ;;  %vm903_vm0 = vcmask (!%p2609_p12), 261120   ;;  %v902_v1 = vld [vmem:[#allocation6 + $0x8] sm:$0xff] (!%p2609_p12) }
 0x1b5   : > { %900 = sbr.rel (%p2609_p12) target bundleno = 444 (0x1bc), region = 136  ;;  %904 = vst.msk [vmem:[#allocation20] sm:$0xff] (!%p2609_p12), %vm903_vm0, %v901_v0  ;;  %905 = vst.msk [vmem:[#allocation20 + $0x8] sm:$0xff] (!%p2609_p12), %vm903_vm0, %v902_v1 }
 0x1bc PF: > { %v3010_v2 = vld [vmem:[%s715_s23] sm:$0xff]   ;;  %v3591_v3 = vmov 0.0   ;;  %v3011_v4 = vld [vmem:[%s715_s23 + $0x8] sm:$0xff]   ;;  %vm3592_vm1 = vmmov 0   ;;  %vm932_vm2 = vcmask 261120   ;;  %s3593_s29 = smov 96  }
 0x1bd   : > { %2717 = vmatprep.subr.bf16.mxu0 %v3591_v3  ;;  %2725 = vmatprep.subr.bf16.mxu1 %v3591_v3  ;;  %v4217_v5 = vld [vmem:[#allocation20] sm:$0xff]  ;;  %v4219_v6 = vld [vmem:[#allocation20 + $0x8] sm:$0xff]  ;;  %v2610_v8 = vld [vmem:[%s723_s19] ss:$0 sm:$0xff]  ;;  %vm984_vm3 = vcmask 64512   ;;  %s3594_s22 = smov 64  }
 0x1be   : > { %2718 = vmatpush3.bf16.msra.mxu0 %v3010_v2  ;;  %2721 = vmatprep.mubr.msk.bf16.mxu0 %vm3592_vm1, %v3591_v3  ;;  %v908_v7 = vpack.c.bf16 %v4219_v6, %v4217_v5  ;;  %v4250_v22 = vld [vmem:[#allocation3] ss:$0 sm:$0xff]  ;;  %v4253_v29 = vld [vmem:[#allocation3 + $0x1] ss:$0 sm:$0xff]  ;;  %s3595_s24 = smov 88   ;;  %vm1125_vm4 = vcmask 1043456  }
 0x1bf   : > { %2719 = vmatprep.subr.bf16.mxu0 %v3591_v3  ;;  %2727 = vmatprep.mubr.msk.bf16.mxu1 %vm3592_vm1, %v3591_v3  ;;  %s3596_s16 = smov 120   ;;  %vm1219_vm5 = vcmask 60416   ;;  %s3597_s23 = smov 56   ;;  %vm1460_vm6 = vcmask 126016   ;;  %vm1701_vm7 = vcmask 191616   ;;  %vm1942_vm8 = vcmask 257216  }
 0x1c0   : > { %s3598_s26 = smov 80   ;;  %s3599_s19 = smov 112   ;;  %vm2192_vm9 = vcmask 523264  }
 0x1c1   : > { %s3600_s27 = smov 48   ;;  %s4582_s15 = sld [smem:[#allocation29_spill]] }
 0x1c2   : > { %2720 = vmatpush3.bf16.msra.mxu0 %v3011_v4 }
 0x1c3   : > { %2731 = vmatprep.subr.bf16.mxu0 %v3591_v3 }
 0x1c5   : > { %2722 = vmatmul.mubr.msk.bf16.vlgmr.msra.gmra.mrb[0].mxu0 %vm932_vm2, %v908_v7 }
 0x1c6   : > { %2733 = vmatprep.mubr.msk.bf16.mxu0 %vm3592_vm1, %v3591_v3 }
 0x1c7   : > { %p2934_p8 = scmp.eq.s32.totalorder %s4582_s15, 1 }
 0x298   : > { %v970_v9 = vpop.f32.mrb[0].mxu0 }
 0x299   : > { %v971_v10 = vadd.f32 %v2610_v8, %v970_v9  ;;  %v2723_v11 = vpop.f32.mrb[1].mxu0 }
 0x29a   : > { %v973_v12 = vpop.f32.mrb[2].mxu0 }
 0x29b   : > { %v4232_v13 = vpack.c.bf16 %v971_v10, %v971_v10  ;;  %v974_v14 = vadd.f32 %v2610_v8, %v973_v12  ;;  %v2724_v15 = vpop.f32.mrb[3].mxu0 }
 0x29d   : > { %982 = vrot.lane.b32.xlu0 %v4232_v13, %s3593_s29  ;;  %v4235_v16 = vpack.c.bf16 %v974_v14, %v974_v14 }
 0x2a1   : > { %1032 = vrot.lane.b32.xlu0 %v4235_v16, %s3593_s29  ;;  %s3601_s29 = smov 72  }
 0x30f   : > { %v983_v17 = vpop.permute.xlu0 %982 }
 0x310   : > { %v989_v18 = vsel %vm984_vm3, %v983_v17, 0 }
 0x311   : > { %2726 = vmatpush3.bf16.xpose.msra.mxu1 %v989_v18 }
 0x312   : > { %2737 = vmatprep.subr.bf16.mxu1 %v3591_v3 }
 0x313   : > { %v1033_v19 = vpop.permute.xlu0 %1032 }
 0x314   : > { %v1038_v20 = vsel %vm984_vm3, %v1033_v19, 0 }
 0x315   : > { %2732 = vmatpush3.bf16.xpose.msra.mxu0 %v1038_v20 }
 0x316   : > { %2743 = vmatprep.subr.bf16.mxu0 %v3591_v3 }
 0x318   : > { %2728 = vmatmul.mubr.msk.bf16.vlgmr.msra.gmra.mrb[0].mxu1 %vm984_vm3, %v4232_v13 }
 0x319   : > { %2739 = vmatprep.mubr.msk.bf16.mxu1 %vm3592_vm1, %v3591_v3 }
 0x31c   : > { %2734 = vmatmul.mubr.msk.bf16.vlgmr.msra.gmra.mrb[4].mxu0 %vm984_vm3, %v4235_v16 }
 0x31d   : > { %2745 = vmatprep.mubr.msk.bf16.mxu0 %vm3592_vm1, %v3591_v3 }
 0x3eb   : > { %v1025_v21 = vpop.f32.mrb[0].mxu1 }
 0x3ec   : > { %v1080_v23 = vmul.f32 0.35355338, %v1025_v21  ;;  %v2729_v24 = vpop.f32.mrb[1].mxu1 }
 0x3ed   : > { %v1028_v25 = vpop.f32.mrb[2].mxu1 }
 0x3ee   : > { %v2730_v26 = vpop.f32.mrb[3].mxu1  ;;  %v1094_v27 = vadd.f32 %v4250_v22, %v1080_v23 }
 0x3ef   : > { %v1074_v28 = vpop.f32.mrb[4].mxu0 }
 0x3f0   : > { %v1081_v30 = vmul.f32 0.35355338, %v1074_v28  ;;  %v2735_v31 = vpop.f32.mrb[5].mxu0  ;;  %v1096_v32 = vsel %vm984_vm3, %v1094_v27, -inf }
 0x3f1   : > { %1097 = vmax.xlane.f32.xlu1 %v1096_v32  ;;  %v1077_v33 = vpop.f32.mrb[6].mxu0 }
 0x3f2   : > { %v2736_v34 = vpop.f32.mrb[7].mxu0  ;;  %v1095_v35 = vadd.f32 %v4253_v29, %v1081_v30 }
 0x3f4   : > { %v1099_v36 = vsel %vm984_vm3, %v1095_v35, -inf }
 0x3f5   : > { %1100 = vmax.xlane.f32.xlu1 %v1099_v36 }
 0x406   : > { %1120 = vrot.lane.b32.xlu1 %v4232_v13, %s3594_s22 }
 0x40a   : > { %1169 = vrot.lane.b32.xlu1 %v4235_v16, %s3594_s22  ;;  %s3602_s22 = smov 104  }
 0x40e   : > { %1224 = vrot.lane.b32.xlu1 %v4232_v13, %s3595_s24 }
 0x47e   : > { %v1098_v37 = vpop.xlane.xlu1 %1097 }
 0x47f   : > { %v1102_v38 = vsub.f32 %v1094_v27, %v1098_v37 }
 0x481   : > { %v1104_v39 = vmul.f32 1.442695, %v1102_v38 }
 0x482   : > { %v1101_v40 = vpop.xlane.xlu1 %1100 }
 0x483   : > { %3021 = vpow2.f32 %v1104_v39  ;;  %v1103_v41 = vsub.f32 %v1095_v35, %v1101_v40 }
 0x485   : > { %v1106_v42 = vmul.f32 1.442695, %v1103_v41 }
 0x486   : > { %v1121_v43 = vpop.permute.xlu1 %1120 }
 0x487   : > { %3023 = vpow2.f32 %v1106_v42  ;;  %v1127_v44 = vsel %vm1125_vm4, %v1121_v43, 0 }
 0x488   : > { %2738 = vmatpush3.bf16.msra.mxu1 %v1127_v44 }
 0x489   : > { %2749 = vmatprep.subr.bf16.mxu1 %v3591_v3 }
 0x48a   : > { %v1170_v45 = vpop.permute.xlu1 %1169 }
 0x48b   : > { %v1175_v46 = vsel %vm1125_vm4, %v1170_v45, 0 }
 0x48c   : > { %2744 = vmatpush3.bf16.msra.mxu0 %v1175_v46 }
 0x48d   : > { %v3022_v47 = vpop.eup %3021  ;;  %2755 = vmatprep.subr.bf16.mxu0 %v3591_v3 }
 0x48e   : > { %v1108_v48 = vsel %vm984_vm3, %v3022_v47, 0.0  ;;  %v1225_v51 = vpop.permute.xlu1 %1224 }
 0x48f   : > { %1109 = vadd.xlane.f32.xlu0 %v1108_v48  ;;  %v1230_v58 = vsel %vm984_vm3, %v1225_v51, 0 }
 0x491   : > { %v3024_v49 = vpop.eup %3023 }
 0x492   : > { %v1111_v50 = vsel %vm984_vm3, %v3024_v49, 0.0 }
 0x493   : > { %1112 = vadd.xlane.f32.xlu1 %v1111_v50 }
 0x4a4   : > { %1274 = vrot.lane.b32.xlu1 %v4235_v16, %s3595_s24  ;;  %s3603_s24 = smov 40  }
 0x4a5   : > { %1222 = vrot.lane.b32.xlu0 %v4232_v13, %s3596_s16 }
 0x4a8   : > { %1272 = vrot.lane.b32.xlu1 %v4235_v16, %s3596_s16  ;;  %s3604_s16 = smov 8  }
 0x51c   : > { %v1110_v52 = vpop.xlane.xlu0 %1109 }
 0x51d   : > { %3025 = vrcp.f32 %v1110_v52 }
 0x520   : > { %v1113_v53 = vpop.xlane.xlu1 %1112  ;;  %v1223_v63 = vpop.permute.xlu0 %1222 }
 0x521   : > { %3027 = vrcp.f32 %v1113_v53 }
 0x524   : > { %v1275_v60 = vpop.permute.xlu1 %1274 }
 0x525   : > { %v1280_v62 = vsel %vm984_vm3, %v1275_v60, 0 }
 0x527   : > { %v3026_v54 = vpop.eup %3025 }
 0x528   : > { %v1116_v55 = vmul.f32 %v3026_v54, %v3022_v47  ;;  %v1273_v0 = vpop.permute.xlu1 %1272 }
 0x52a   : > { %v1118_v56 = vpack.c.bf16 %v1116_v55, %v1116_v55 }
 0x52b   : > { %v3028_v57 = vpop.eup %3027 }
 0x52c   : > { %v1117_v59 = vmul.f32 %v3028_v57, %v3024_v49  ;;  %2740 = vmatmul.mubr.msk.bf16.vlgmr.msra.gmra.mrb[4].mxu1 %vm984_vm3, %v1118_v56 }
 0x52d   : > { %2750 = vmatpush3.bf16.xpose.msra.mxu1 %v1230_v58  ;;  %2751 = vmatprep.mubr.msk.bf16.mxu1 %vm3592_vm1, %v3591_v3 }
 0x52e   : > { %v1119_v61 = vpack.c.bf16 %v1117_v59, %v1117_v59  ;;  %2761 = vmatprep.subr.bf16.mxu1 %v3591_v3 }
 0x530   : > { %2746 = vmatmul.mubr.msk.bf16.vlgmr.msra.gmra.mrb[8].mxu0 %vm984_vm3, %v1119_v61 }
 0x531   : > { %2756 = vmatpush3.bf16.xpose.msra.mxu0 %v1280_v62  ;;  %2757 = vmatprep.mubr.msk.bf16.mxu0 %vm3592_vm1, %v3591_v3 }
 0x532   : > { %2767 = vmatprep.subr.bf16.mxu0 %v3591_v3 }
 0x534   : > { %2752 = vmatmul.mubr.msk.bf16.vlgmr.msra.gmra.mrb[8].mxu1 %vm984_vm3, %v1223_v63 }
 0x535   : > { %2763 = vmatprep.mubr.msk.bf16.mxu1 %vm3592_vm1, %v3591_v3 }
 0x538   : > { %2758 = vmatmul.mubr.msk.bf16.vlgmr.msra.gmra.mrb[12].mxu0 %vm984_vm3, %v1273_v0 }
 0x539   : > { %2769 = vmatprep.mubr.msk.bf16.mxu0 %vm3592_vm1, %v3591_v3 }
 0x5ff   : > { %v1163_v1 = vpop.f32.mrb[4].mxu1 }
 0x600   : > { %v1217_v2 = vpack.c.bf16 %v1163_v1, %v1163_v1  ;;  %v2741_v4 = vpop.f32.mrb[5].mxu1 }
 0x601   : > { %v1166_v7 = vpop.f32.mrb[6].mxu1 }
 0x602   : > { %1220 = vst.msk [vmem:[#allocation2] sm:$0xf] %vm1219_vm5, %v1217_v2  ;;  %v2742_v8 = vpop.f32.mrb[7].mxu1 }
 0x603   : > { %v1211_v9 = vpop.f32.mrb[8].mxu0 }
 0x604   : > { %v1218_v10 = vpack.c.bf16 %v1211_v9, %v1211_v9  ;;  %v2747_v11 = vpop.f32.mrb[9].mxu0 }
 0x605   : > { %v1214_v12 = vpop.f32.mrb[10].mxu0 }
 0x606   : > { %1221 = vst.msk [vmem:[#allocation2 + $0x4] sm:$0xf] %vm1219_vm5, %v1218_v10  ;;  %v2748_v14 = vpop.f32.mrb[11].mxu0 }
 0x607   : > { %v1266_v15 = vpop.f32.mrb[8].mxu1 }
 0x608   : > { %v1322_v17 = vmul.f32 0.35355338, %v1266_v15  ;;  %v2753_v18 = vpop.f32.mrb[9].mxu1 }
 0x609   : > { %v1269_v19 = vpop.f32.mrb[10].mxu1 }
 0x60a   : > { %v2754_v20 = vpop.f32.mrb[11].mxu1  ;;  %v1324_v21 = vadd.f32 %v4250_v22, %v1322_v17 }
 0x60b   : > { %v1316_v23 = vpop.f32.mrb[12].mxu0 }
 0x60c   : > { %v1323_v24 = vmul.f32 0.35355338, %v1316_v23  ;;  %v2759_v25 = vpop.f32.mrb[13].mxu0  ;;  %v1326_v26 = vsel %vm984_vm3, %v1324_v21, -inf }
 0x60d   : > { %1327 = vmax.xlane.f32.xlu1 %v1326_v26  ;;  %v1319_v27 = vpop.f32.mrb[14].mxu0 }
 0x60e   : > { %v2760_v28 = vpop.f32.mrb[15].mxu0  ;;  %v1325_v30 = vadd.f32 %v4253_v29, %v1323_v24 }
 0x610   : > { %v1329_v31 = vsel %vm984_vm3, %v1325_v30, -inf }
 0x611   : > { %1330 = vmax.xlane.f32.xlu0 %v1329_v31 }
 0x61e   : > { %1350 = vrot.lane.b32.xlu1 %v4232_v13, %s3597_s23 }
 0x622   : > { %1465 = vrot.lane.b32.xlu1 %v4232_v13, %s3598_s26 }
 0x627   : > { %1398 = vrot.lane.b32.xlu0 %v4235_v16, %s3597_s23  ;;  %s3605_s23 = smov 16  }
 0x62b   : > { %1463 = vrot.lane.b32.xlu0 %v4232_v13, %s3599_s19 }
 0x69a   : > { %v1328_v32 = vpop.xlane.xlu1 %1327 }
 0x69b   : > { %v1332_v33 = vsub.f32 %v1324_v21, %v1328_v32 }
 0x69d   : > { %v1334_v34 = vmul.f32 1.442695, %v1332_v33 }
 0x69e   : > { %v1351_v35 = vpop.permute.xlu1 %1350  ;;  %v1331_v36 = vpop.xlane.xlu0 %1330 }
 0x69f   : > { %3029 = vpow2.f32 %v1334_v34  ;;  %v1356_v37 = vsel %vm1125_vm4, %v1351_v35, 0  ;;  %v1333_v38 = vsub.f32 %v1325_v30, %v1331_v36 }
 0x6a0   : > { %2762 = vmatpush3.bf16.msra.mxu1 %v1356_v37 }
 0x6a1   : > { %v1336_v39 = vmul.f32 1.442695, %v1333_v38  ;;  %2773 = vmatprep.subr.bf16.mxu1 %v3591_v3 }
 0x6a2   : > { %v1399_v40 = vpop.permute.xlu0 %1398  ;;  %v1466_v46 = vpop.permute.xlu1 %1465 }
 0x6a3   : > { %3031 = vpow2.f32 %v1336_v39  ;;  %v1404_v41 = vsel %vm1125_vm4, %v1399_v40, 0  ;;  %v1471_v53 = vsel %vm984_vm3, %v1466_v46, 0 }
 0x6a4   : > { %2768 = vmatpush3.bf16.msra.mxu0 %v1404_v41 }
 0x6a5   : > { %2779 = vmatprep.subr.bf16.mxu0 %v3591_v3 }
 0x6a6   : > { %v1464_v58 = vpop.permute.xlu0 %1463 }
 0x6a9   : > { %v3030_v42 = vpop.eup %3029 }
 0x6aa   : > { %v1338_v43 = vsel %vm984_vm3, %v3030_v42, 0.0 }
 0x6ab   : > { %1339 = vadd.xlane.f32.xlu1 %v1338_v43 }
 0x6ad   : > { %v3032_v44 = vpop.eup %3031 }
 0x6ae   : > { %v1341_v45 = vsel %vm984_vm3, %v3032_v44, 0.0 }
 0x6af   : > { %1342 = vadd.xlane.f32.xlu1 %v1341_v45 }
 0x6c0   : > { %1515 = vrot.lane.b32.xlu1 %v4235_v16, %s3598_s26  ;;  %s3606_s26 = smov 24  }
 0x6c4   : > { %1513 = vrot.lane.b32.xlu1 %v4235_v16, %s3599_s19 }
 0x738   : > { %v1340_v47 = vpop.xlane.xlu1 %1339 }
 0x739   : > { %3033 = vrcp.f32 %v1340_v47 }
 0x73c   : > { %v1343_v48 = vpop.xlane.xlu1 %1342 }
 0x73d   : > { %3035 = vrcp.f32 %v1343_v48 }
 0x740   : > { %v1516_v55 = vpop.permute.xlu1 %1515 }
 0x741   : > { %v1521_v57 = vsel %vm984_vm3, %v1516_v55, 0 }
 0x743   : > { %v3034_v49 = vpop.eup %3033 }
 0x744   : > { %v1346_v50 = vmul.f32 %v3034_v49, %v3030_v42  ;;  %v1514_v59 = vpop.permute.xlu1 %1513 }
 0x746   : > { %v1348_v51 = vpack.c.bf16 %v1346_v50, %v1346_v50 }
 0x747   : > { %v3036_v52 = vpop.eup %3035 }
 0x748   : > { %v1347_v54 = vmul.f32 %v3036_v52, %v3032_v44  ;;  %2764 = vmatmul.mubr.msk.bf16.vlgmr.msra.gmra.mrb[12].mxu1 %vm984_vm3, %v1348_v51 }
 0x749   : > { %2774 = vmatpush3.bf16.xpose.msra.mxu1 %v1471_v53  ;;  %2775 = vmatprep.mubr.msk.bf16.mxu1 %vm3592_vm1, %v3591_v3 }
 0x74a   : > { %v1349_v56 = vpack.c.bf16 %v1347_v54, %v1347_v54  ;;  %2785 = vmatprep.subr.bf16.mxu1 %v3591_v3 }
 0x74c   : > { %2770 = vmatmul.mubr.msk.bf16.vlgmr.msra.gmra.mrb[16].mxu0 %vm984_vm3, %v1349_v56 }
 0x74d   : > { %2780 = vmatpush3.bf16.xpose.msra.mxu0 %v1521_v57  ;;  %2781 = vmatprep.mubr.msk.bf16.mxu0 %vm3592_vm1, %v3591_v3 }
 0x74e   : > { %2791 = vmatprep.subr.bf16.mxu0 %v3591_v3 }
 0x750   : > { %2776 = vmatmul.mubr.msk.bf16.vlgmr.msra.gmra.mrb[16].mxu1 %vm984_vm3, %v1464_v58 }
 0x751   : > { %2787 = vmatprep.mubr.msk.bf16.mxu1 %vm3592_vm1, %v3591_v3 }
 0x754   : > { %2782 = vmatmul.mubr.msk.bf16.vlgmr.msra.gmra.mrb[20].mxu0 %vm984_vm3, %v1514_v59 }
 0x755   : > { %2793 = vmatprep.mubr.msk.bf16.mxu0 %vm3592_vm1, %v3591_v3 }
 0x81b   : > { %v4318_v60 = vpop.f32.mrb[12].mxu1 }
 0x81c   : > { %v2765_v61 = vpop.f32.mrb[13].mxu1 }
 0x81d   : > { %v1395_v62 = vpop.f32.mrb[14].mxu1 }
 0x81e   : > { %v2766_v63 = vpop.f32.mrb[15].mxu1 }
 0x81f   : > { %v4320_v0 = vpop.f32.mrb[16].mxu0 }
 0x820   : > { %v2771_v1 = vpop.f32.mrb[17].mxu0 }
 0x821   : > { %v1443_v2 = vpop.f32.mrb[18].mxu0 }
 0x822   : > { %v2772_v4 = vpop.f32.mrb[19].mxu0 }
 0x823   : > { %v1507_v7 = vpop.f32.mrb[16].mxu1 }
 0x824   : > { %v1563_v8 = vmul.f32 0.35355338, %v1507_v7  ;;  %v2777_v9 = vpop.f32.mrb[17].mxu1 }
 0x825   : > { %v1510_v10 = vpop.f32.mrb[18].mxu1 }
 0x826   : > { %v2778_v11 = vpop.f32.mrb[19].mxu1  ;;  %v1565_v12 = vadd.f32 %v4250_v22, %v1563_v8 }
 0x827   : > { %v1557_v14 = vpop.f32.mrb[20].mxu0 }
 0x828   : > { %v1564_v15 = vmul.f32 0.35355338, %v1557_v14  ;;  %v2783_v17 = vpop.f32.mrb[21].mxu0  ;;  %v1567_v18 = vsel %vm984_vm3, %v1565_v12, -inf }
 0x829   : > { %1568 = vmax.xlane.f32.xlu0 %v1567_v18  ;;  %v1560_v19 = vpop.f32.mrb[22].mxu0  ;;  %v2666_v18 = vpack.c.bf16 %v4320_v0, %v4320_v0 }
 0x82a   : > { %v2784_v20 = vpop.f32.mrb[23].mxu0  ;;  %v1566_v21 = vadd.f32 %v4253_v29, %v1564_v15 }
 0x82c   : > { %v1570_v23 = vsel %vm984_vm3, %v1566_v21, -inf }
 0x82d   : > { %1571 = vmax.xlane.f32.xlu1 %v1570_v23 }
 0x83e   : > { %1591 = vrot.lane.b32.xlu1 %v4232_v13, %s3600_s27 }
 0x842   : > { %1706 = vrot.lane.b32.xlu1 %v4232_v13, %s3601_s29 }
 0x846   : > { %1756 = vrot.lane.b32.xlu1 %v4235_v16, %s3601_s29 }
 0x84a   : > { %1754 = vrot.lane.b32.xlu1 %v4235_v16, %s3602_s22 }
 0x8b6   : > { %v1569_v24 = vpop.xlane.xlu0 %1568 }
 0x8b7   : > { %v1573_v25 = vsub.f32 %v1565_v12, %v1569_v24 }
 0x8b9   : > { %v1575_v26 = vmul.f32 1.442695, %v1573_v25 }
 0x8ba   : > { %v1572_v27 = vpop.xlane.xlu1 %1571 }
 0x8bb   : > { %3037 = vpow2.f32 %v1575_v26  ;;  %v1574_v28 = vsub.f32 %v1566_v21, %v1572_v27 }
 0x8bd   : > { %v1577_v30 = vmul.f32 1.442695, %v1574_v28 }
 0x8be   : > { %v1592_v31 = vpop.permute.xlu1 %1591 }
 0x8bf   : > { %3039 = vpow2.f32 %v1577_v30  ;;  %v1597_v32 = vsel %vm1125_vm4, %v1592_v31, 0 }
 0x8c0   : > { %2786 = vmatpush3.bf16.msra.mxu1 %v1597_v32 }
 0x8c1   : > { %2797 = vmatprep.subr.bf16.mxu1 %v3591_v3 }
 0x8c2   : > { %v1707_v42 = vpop.permute.xlu1 %1706 }
 0x8c3   : > { %v1712_v46 = vsel %vm984_vm3, %v1707_v42, 0 }
 0x8c5   : > { %v3038_v33 = vpop.eup %3037 }
 0x8c6   : > { %v1579_v34 = vsel %vm984_vm3, %v3038_v33, 0.0  ;;  %v1757_v48 = vpop.permute.xlu1 %1756 }
 0x8c7   : > { %1580 = vadd.xlane.f32.xlu0 %v1579_v34  ;;  %v1762_v50 = vsel %vm984_vm3, %v1757_v48, 0 }
 0x8c9   : > { %v3040_v35 = vpop.eup %3039 }
 0x8ca   : > { %v1582_v36 = vsel %vm984_vm3, %v3040_v35, 0.0  ;;  %v1755_v52 = vpop.permute.xlu1 %1754 }
 0x8cb   : > { %1583 = vadd.xlane.f32.xlu0 %v1582_v36 }
 0x8e1   : > { %1639 = vrot.lane.b32.xlu0 %v4235_v16, %s3600_s27 }
 0x8e5   : > { %1704 = vrot.lane.b32.xlu0 %v4232_v13, %s3602_s22 }
 0x954   : > { %v1581_v37 = vpop.xlane.xlu0 %1580 }
 0x955   : > { %3041 = vrcp.f32 %v1581_v37 }
 0x958   : > { %v1584_v38 = vpop.xlane.xlu0 %1583 }
 0x959   : > { %3043 = vrcp.f32 %v1584_v38 }
 0x95c   : > { %v1640_v39 = vpop.permute.xlu0 %1639 }
 0x95d   : > { %v1645_v40 = vsel %vm1125_vm4, %v1640_v39, 0 }
 0x95e   : > { %2792 = vmatpush3.bf16.msra.mxu0 %v1645_v40 }
 0x95f   : > { %v3042_v41 = vpop.eup %3041  ;;  %2803 = vmatprep.subr.bf16.mxu0 %v3591_v3 }
 0x960   : > { %v1587_v43 = vmul.f32 %v3042_v41, %v3038_v33  ;;  %v1705_v51 = vpop.permute.xlu0 %1704 }
 0x962   : > { %v1589_v44 = vpack.c.bf16 %v1587_v43, %v1587_v43 }
 0x963   : > { %v3044_v45 = vpop.eup %3043 }
 0x964   : > { %v1588_v47 = vmul.f32 %v3044_v45, %v3040_v35  ;;  %2788 = vmatmul.mubr.msk.bf16.vlgmr.msra.gmra.mrb[20].mxu1 %vm984_vm3, %v1589_v44  ;;  %v3012_v44 = vld [vmem:[%s732_s18] sm:$0xff]   ;;  %v3013_v45 = vld [vmem:[%s732_s18 + $0x8] sm:$0xff]   ;;  %s3607_s18 = smov [#allocation20]  }
 0x965   : > { %2798 = vmatpush3.bf16.xpose.msra.mxu1 %v1712_v46  ;;  %2799 = vmatprep.mubr.msk.bf16.mxu1 %vm3592_vm1, %v3591_v3 }
 0x966   : > { %v1590_v49 = vpack.c.bf16 %v1588_v47, %v1588_v47  ;;  %2809 = vmatprep.subr.bf16.mxu1 %v3591_v3 }
 0x968   : > { %2794 = vmatmul.mubr.msk.bf16.vlgmr.msra.gmra.mrb[24].mxu0 %vm984_vm3, %v1590_v49 }
 0x969   : > { %2804 = vmatpush3.bf16.xpose.msra.mxu0 %v1762_v50  ;;  %2805 = vmatprep.mubr.msk.bf16.mxu0 %vm3592_vm1, %v3591_v3 }
 0x96a   : > { %2815 = vmatprep.subr.bf16.mxu0 %v3591_v3 }
 0x96c   : > { %2800 = vmatmul.mubr.msk.bf16.vlgmr.msra.gmra.mrb[24].mxu1 %vm984_vm3, %v1705_v51 }
 0x96d   : > { %2811 = vmatprep.mubr.msk.bf16.mxu1 %vm3592_vm1, %v3591_v3 }
 0x970   : > { %2806 = vmatmul.mubr.msk.bf16.vlgmr.msra.gmra.mrb[28].mxu0 %vm984_vm3, %v1755_v52 }
 0x971   : > { %2817 = vmatprep.mubr.msk.bf16.mxu0 %vm3592_vm1, %v3591_v3 }
 0xa37   : > { %v1633_v53 = vpop.f32.mrb[20].mxu1 }
 0xa38   : > { %v2789_v54 = vpop.f32.mrb[21].mxu1  ;;  %v2667_v33 = vpack.c.bf16 %v1633_v53, %v1633_v53 }
 0xa39   : > { %v1636_v55 = vpop.f32.mrb[22].mxu1 }
 0xa3a   : > { %v2790_v56 = vpop.f32.mrb[23].mxu1 }
 0xa3b   : > { %v1681_v57 = vpop.f32.mrb[24].mxu0 }
 0xa3c   : > { %v2795_v58 = vpop.f32.mrb[25].mxu0  ;;  %v2668_v19 = vpack.c.bf16 %v1681_v57, %v1681_v57 }
 0xa3d   : > { %v1684_v59 = vpop.f32.mrb[26].mxu0 }
 0xa3e   : > { %v2796_v61 = vpop.f32.mrb[27].mxu0  ;;  %v2638_v59 = vld [vmem:[%s740_s14] ss:$0 sm:$0xff]  ;;  %s2294_s14 = sshll.u32 %s3607_s18, 4  ;;  %s2295_s14 = int_to_ptr.vmem [resolvable:$true] %s2294_s14 }
 0xa3f   : > { %v1748_v62 = vpop.f32.mrb[24].mxu1  ;;  %p3488_p13 = scmp.lt.s32.totalorder %s2295_s14, %s2295_s14 }
 0xa40   : > { %v1804_v63 = vmul.f32 0.35355338, %v1748_v62  ;;  %v2801_v1 = vpop.f32.mrb[25].mxu1 }
 0xa41   : > { %v1751_v2 = vpop.f32.mrb[26].mxu1 }
 0xa42   : > { %v2802_v4 = vpop.f32.mrb[27].mxu1  ;;  %v1806_v7 = vadd.f32 %v4250_v22, %v1804_v63  ;;  %v2665_v22 = vpack.c.bf16 %v4318_v60, %v4318_v60 }
 0xa43   : > { %v1798_v8 = vpop.f32.mrb[28].mxu0 }
 0xa44   : > { %v1805_v9 = vmul.f32 0.35355338, %v1798_v8  ;;  %v2807_v10 = vpop.f32.mrb[29].mxu0  ;;  %v1808_v11 = vsel %vm984_vm3, %v1806_v7, -inf }
 0xa45   : > { %1809 = vmax.xlane.f32.xlu0 %v1808_v11  ;;  %v1801_v12 = vpop.f32.mrb[30].mxu0 }
 0xa46   : > { %v2808_v14 = vpop.f32.mrb[31].mxu0  ;;  %v1807_v15 = vadd.f32 %v4253_v29, %v1805_v9 }
 0xa48   : > { %v1811_v17 = vsel %vm984_vm3, %v1807_v15, -inf }
 0xa49   : > { %1812 = vmax.xlane.f32.xlu1 %v1811_v17 }
 0xa5a   : > { %1832 = vrot.lane.b32.xlu1 %v4232_v13, %s3603_s24 }
 0xa5e   : > { %1454 = vrot.lane.b32.xlu1 %v2665_v22, %s3604_s16 }
 0xa62   : > { %1456 = vrot.lane.b32.xlu1 %v2666_v18, %s3604_s16 }
 0xa66   : > { %1697 = vrot.lane.b32.xlu1 %v2668_v19, %s3605_s23 }
 0xad2   : > { %v1810_v29 = vpop.xlane.xlu0 %1809 }
 0xad3   : > { %v1814_v20 = vsub.f32 %v1806_v7, %v1810_v29 }
 0xad5   : > { %v1816_v21 = vmul.f32 1.442695, %v1814_v20  ;;  %v3016_v20 = vld [vmem:[%s765_s4 + $0x8] sm:$0xff]  }
 0xad6   : > { %v1813_v23 = vpop.xlane.xlu1 %1812 }
 0xad7   : > { %3045 = vpow2.f32 %v1816_v21  ;;  %v1815_v13 = vsub.f32 %v1807_v15, %v1813_v23 }
 0xad9   : > { %v1818_v24 = vmul.f32 1.442695, %v1815_v13 }
 0xada   : > { %v1833_v25 = vpop.permute.xlu1 %1832 }
 0xadb   : > { %3047 = vpow2.f32 %v1818_v24  ;;  %v1838_v60 = vsel %vm1125_vm4, %v1833_v25, 0 }
 0xadc   : > { %2810 = vmatpush3.bf16.msra.mxu1 %v1838_v60 }
 0xadd   : > { %2821 = vmatprep.subr.bf16.mxu1 %v3591_v3 }
 0xade   : > { %v1455_v0 = vpop.permute.xlu1 %1454 }
 0xadf   : > { %1461 = vst.msk [vmem:[#allocation2] sm:$0xf] %vm1460_vm6, %v1455_v0 }
 0xae1   : > { %v3046_v26 = vpop.eup %3045 }
 0xae2   : > { %v1457_v27 = vpop.permute.xlu1 %1456  ;;  %v1820_v28 = vsel %vm984_vm3, %v3046_v26, 0.0 }
 0xae3   : > { %1462 = vst.msk [vmem:[#allocation2 + $0x4] sm:$0xf] %vm1460_vm6, %v1457_v27  ;;  %1821 = vadd.xlane.f32.xlu0 %v1820_v28  ;;  %v2643_v27 = vld [vmem:[%s748_s1] ss:$0 sm:$0xff]  ;;  %s3481_s1 = scalar_lea.vmem %s2295_s14, 256 }
 0xae4   : > { %p3482_p0 = scmp.ne.s32.totalorder %s2295_s14, %s3481_s1  ;;  %p3489_p3 = scmp.lt.s32.totalorder %s3481_s1, %s3481_s1 }
 0xae5   : > { %v3048_v30 = vpop.eup %3047 }
 0xae6   : > { %v1698_v31 = vpop.permute.xlu1 %1697  ;;  %v1823_v32 = vsel %vm984_vm3, %v3048_v30, 0.0  ;;  %p3483_p2 = pnand %p3482_p0, %p2934_p8  ;;  %p3490_p6 = por %p3489_p3, %p3488_p13 }
 0xae7   : > { %1703 = vst.msk [vmem:[#allocation2 + $0x4] sm:$0xf] %vm1701_vm7, %v1698_v31  ;;  %1824 = vadd.xlane.f32.xlu0 %v1823_v32  ;;  %v2644_v32 = vld [vmem:[%s756_s2] ss:$0 sm:$0xff] }
 0xae8   : > { %p3484_p4 = pneg %p3483_p2 }
 0xaea   : > { %p3491_p11 = pnand %p3490_p6, %p3484_p4 }
 0xafd   : > { %1880 = vrot.lane.b32.xlu0 %v4235_v16, %s3603_s24 }
 0xb01   : > { %1695 = vrot.lane.b32.xlu0 %v2667_v33, %s3605_s23 }
 0xb70   : > { %v1822_v34 = vpop.xlane.xlu0 %1821 }
 0xb71   : > { %3049 = vrcp.f32 %v1822_v34 }
 0xb74   : > { %v1825_v35 = vpop.xlane.xlu0 %1824 }
 0xb75   : > { %3051 = vrcp.f32 %v1825_v35 }
 0xb78   : > { %v1881_v36 = vpop.permute.xlu0 %1880 }
 0xb79   : > { %v1886_v37 = vsel %vm1125_vm4, %v1881_v36, 0 }
 0xb7a   : > { %2816 = vmatpush3.bf16.msra.mxu0 %v1886_v37  ;;  %v3017_v37 = vld [vmem:[%s4207_s0] sm:$0xff]  }
 0xb7b   : > { %v3050_v38 = vpop.eup %3049  ;;  %2829 = vmatprep.subr.bf16.mxu0 %v3591_v3 }
 0xb7c   : > { %v1828_v39 = vmul.f32 %v3050_v38, %v3046_v26  ;;  %v1696_v40 = vpop.permute.xlu0 %1695  ;;  %v3018_v38 = vld [vmem:[%s4207_s0 + $0x8] sm:$0xff]  }
 0xb7d   : > { %1702 = vst.msk [vmem:[#allocation2] sm:$0xf] %vm1701_vm7, %v1696_v40  ;;  %v3020_v40 = vld [vmem:[%s4207_s0 + $0x18] sm:$0xff]  }
 0xb7e   : > { %v1830_v16 = vpack.c.bf16 %v1828_v39, %v1828_v39  ;;  %v3019_v39 = vld [vmem:[%s4207_s0 + $0x10] sm:$0xff]  }
 0xb7f   : > { %v3052_v41 = vpop.eup %3051 }
 0xb80   : > { %v1829_v42 = vmul.f32 %v3052_v41, %v3048_v30  ;;  %2812 = vmatmul.mubr.msk.bf16.vlgmr.msra.gmra.mrb[28].mxu1 %vm984_vm3, %v1830_v16  ;;  %v2645_v16 = vld [vmem:[%s773_s28] ss:$0 sm:$0xff] }
 0xb81   : > { %2825 = vmatprep.mubr.msk.bf16.mxu1 %vm3592_vm1, %v3591_v3  ;;  %2822 = vmatpush3.bf16.msra.mxu1 %v3012_v44 }
 0xb82   : > { %v1831_v43 = vpack.c.bf16 %v1829_v42, %v1829_v42  ;;  %2823 = vmatprep.subr.bf16.mxu1 %v3591_v3 }
 0xb84   : > { %2818 = vmatmul.mubr.msk.bf16.vlgmr.msra.gmra.mrb[32].mxu0 %vm984_vm3, %v1831_v43 }
 0xb85   : > { %2833 = vmatprep.mubr.msk.bf16.mxu0 %vm3592_vm1, %v3591_v3  ;;  %2824 = vmatpush3.bf16.msra.mxu1 %v3013_v45 }
 0xb86   : > { %2837 = vmatprep.subr.bf16.mxu1 %v3591_v3 }
 0xc53   : > { %v1874_v46 = vpop.f32.mrb[28].mxu1 }
 0xc54   : > { %v2669_v47 = vpack.c.bf16 %v1874_v46, %v1874_v46  ;;  %v2813_v48 = vpop.f32.mrb[29].mxu1 }
 0xc55   : > { %v1877_v49 = vpop.f32.mrb[30].mxu1 }
 0xc56   : > { %1936 = vrot.lane.b32.xlu0 %v2669_v47, %s3606_s26  ;;  %v2814_v50 = vpop.f32.mrb[31].mxu1 }
 0xc57   : > { %v1922_v51 = vpop.f32.mrb[32].mxu0 }
 0xc58   : > { %v2670_v52 = vpack.c.bf16 %v1922_v51, %v1922_v51  ;;  %v2819_v53 = vpop.f32.mrb[33].mxu0 }
 0xc59   : > { %v1925_v54 = vpop.f32.mrb[34].mxu0 }
 0xc5a   : > { %1938 = vrot.lane.b32.xlu1 %v2670_v52, %s3606_s26  ;;  %v2820_v55 = vpop.f32.mrb[35].mxu0 }
 0xcc8   : > { %v1937_v56 = vpop.permute.xlu0 %1936 }
 0xcc9   : > { %1943 = vst.msk [vmem:[#allocation2] sm:$0xf] %vm1942_vm8, %v1937_v56 }
 0xccc   : > { %v1939_v57 = vpop.permute.xlu1 %1938 }
 0xccd   : > { %1944 = vst.msk [vmem:[#allocation2 + $0x4] sm:$0xf] %vm1942_vm8, %v1939_v57 }
 0xcd4   : > { %v3014_v58 = vld [vmem:[#allocation2] sm:$0xff]  }
 0xcd5   : > { %2826 = vmatmul.mubr.msk.bf16.vlgmr.msra.gmra.mrb[32].mxu1 %vm932_vm2, %v3014_v58 }
 0xcd6   : > { %2845 = vmatprep.mubr.msk.bf16.mxu1 %vm3592_vm1, %v3591_v3  ;;  %2838 = vmatpush3.bf16.msra.mxu1 %v3017_v37 }
 0xcd7   : > { %2839 = vmatprep.subr.bf16.mxu1 %v3591_v3 }
 0xcda   : > { %2840 = vmatpush3.bf16.msra.mxu1 %v3018_v38 }
 0xcdb   : > { %2841 = vmatprep.subr.bf16.mxu1 %v3591_v3 }
 0xcde   : > { %2842 = vmatpush3.bf16.msra.mxu1 %v3019_v39 }
 0xcdf   : > { %2843 = vmatprep.subr.bf16.mxu1 %v3591_v3 }
 0xce2   : > { %2844 = vmatpush3.bf16.msra.mxu1 %v3020_v40 }
 0xda8   : > { %v2012_v61 = vpop.f32.mrb[32].mxu1 }
 0xda9   : > { %v2013_v62 = vadd.f32 %v2638_v59, %v2012_v61  ;;  %v2827_v63 = vpop.f32.mrb[33].mxu1 }
 0xdaa   : > { %v2015_v1 = vpop.f32.mrb[34].mxu1 }
 0xdab   : > { %v2016_v2 = vadd.f32 %v2638_v59, %v2015_v1  ;;  %v2828_v4 = vpop.f32.mrb[35].mxu1  ;;  %v2019_v7 = vadd.f32 %v2013_v62, %v4217_v5 }
 0xdac   : > { %v2649_v4 = vld [vmem:[%s790_s25] ss:$0 sm:$0xff] }
 0xdad   : > { %v2023_v8 = vsel %vm932_vm2, %v2019_v7, 0.0  ;;  %v2020_v9 = vadd.f32 %v2016_v2, %v4219_v6  ;;  %v3015_v6 = vld [vmem:[%s765_s4] sm:$0xff]  }
 0xdae   : > { %2024 = vadd.xlane.f32.xlu0 %v2023_v8  ;;  %2830 = vmatpush3.bf16.msra.mxu0 %v3015_v6 }
 0xdaf   : > { %v2026_v10 = vsel %vm932_vm2, %v2020_v9, 0.0  ;;  %2831 = vmatprep.subr.bf16.mxu0 %v3591_v3 }
 0xdb0   : > { %2027 = vadd.xlane.f32.xlu1 %v2026_v10 }
 0xdb2   : > { %2832 = vmatpush3.bf16.msra.mxu0 %v3016_v20 }
 0xe3b   : > { %v2025_v11 = vpop.xlane.xlu0 %2024 }
 0xe3c   : > { %v2030_v12 = vmul.f32 0.03125, %v2025_v11 }
 0xe3d   : > { %v2028_v14 = vpop.xlane.xlu1 %2027 }
 0xe3e   : > { %v2032_v15 = vsub.f32 %v2019_v7, %v2030_v12  ;;  %v2031_v17 = vmul.f32 0.03125, %v2028_v14 }
 0xe40   : > { %v2033_v22 = vsub.f32 %v2020_v9, %v2031_v17  ;;  %v2034_v18 = vmul.f32 %v2032_v15, %v2032_v15 }
 0xe42   : > { %v2036_v19 = vsel %vm932_vm2, %v2034_v18, 0.0  ;;  %v2035_v5 = vmul.f32 %v2033_v22, %v2033_v22 }
 0xe43   : > { %2037 = vadd.xlane.f32.xlu0 %v2036_v19 }
 0xe44   : > { %v2039_v29 = vsel %vm932_vm2, %v2035_v5, 0.0 }
 0xe47   : > { %2040 = vadd.xlane.f32.xlu0 %v2039_v29 }
 0xed0   : > { %v2038_v21 = vpop.xlane.xlu0 %2037 }
 0xed1   : > { %v2042_v23 = vmul.f32 0.03125, %v2038_v21 }
 0xed3   : > { %v2044_v13 = vadd.f32 1e-12, %v2042_v23 }
 0xed4   : > { %v2041_v24 = vpop.xlane.xlu0 %2040 }
 0xed5   : > { %3053 = vrsqrt.f32 %v2044_v13  ;;  %v2043_v25 = vmul.f32 0.03125, %v2041_v24 }
 0xed7   : > { %v2045_v60 = vadd.f32 1e-12, %v2043_v25 }
 0xed9   : > { %3055 = vrsqrt.f32 %v2045_v60 }
 0xedf   : > { %v3054_v0 = vpop.eup %3053 }
 0xee0   : > { %v2048_v26 = vmul.f32 %v3054_v0, %v2032_v15 }
 0xee2   : > { %v2056_v30 = vmul.f32 %v2643_v27, %v2048_v26 }
 0xee3   : > { %v3056_v28 = vpop.eup %3055 }
 0xee4   : > { %v2049_v31 = vmul.f32 %v3056_v28, %v2033_v22  ;;  %v2064_v34 = vadd.f32 %v2644_v32, %v2056_v30 }
 0xee6   : > { %v2057_v33 = vmul.f32 %v2643_v27, %v2049_v31  ;;  %v2655_v31 = vld [vmem:[%s798_s12] ss:$0 sm:$0xff] }
 0xee8   : > { %v2065_v35 = vadd.f32 %v2644_v32, %v2057_v33 }
 0xeea   : > { %v2066_v36 = vpack.c.bf16 %v2065_v35, %v2064_v34 }
 0xeec   : > { %2834 = vmatmul.mubr.msk.bf16.vlgmr.msra.gmra.mrb[36].mxu0 %vm932_vm2, %v2066_v36 }
 0xfbf   : > { %v2127_v41 = vpop.f32.mrb[36].mxu0 }
 0xfc0   : > { %v2128_v42 = vadd.f32 %v2645_v16, %v2127_v41  ;;  %v2835_v43 = vpop.f32.mrb[37].mxu0 }
 0xfc1   : > { %v2130_v44 = vpop.f32.mrb[38].mxu0 }
 0xfc2   : > { %v2136_v45 = vmul.f32 0.044715, %v2128_v42  ;;  %v2131_v46 = vadd.f32 %v2645_v16, %v2130_v44  ;;  %v2836_v47 = vpop.f32.mrb[39].mxu0  ;;  %v2134_v59 = vmul.f32 0.5, %v2128_v42 }
 0xfc4   : > { %v2138_v48 = vmul.f32 %v2136_v45, %v2128_v42  ;;  %v2137_v49 = vmul.f32 0.044715, %v2131_v46  ;;  %v2135_v61 = vmul.f32 0.5, %v2131_v46 }
 0xfc6   : > { %v2140_v50 = vmul.f32 %v2138_v48, %v2128_v42  ;;  %v2139_v51 = vmul.f32 %v2137_v49, %v2131_v46 }
 0xfc8   : > { %v2142_v52 = vadd.f32 %v2140_v50, %v2128_v42  ;;  %v2141_v53 = vmul.f32 %v2139_v51, %v2131_v46 }
 0xfca   : > { %v2144_v54 = vmul.f32 0.7978846, %v2142_v52  ;;  %v2143_v55 = vadd.f32 %v2141_v53, %v2131_v46 }
 0xfcc   : > { %3057 = vtanh.f32 %v2144_v54  ;;  %v2145_v3 = vmul.f32 0.7978846, %v2143_v55 }
 0xfce   : > { %3059 = vtanh.f32 %v2145_v3 }
 0xfd6   : > { %v3058_v56 = vpop.eup %3057 }
 0xfd7   : > { %v2148_v57 = vadd.f32 1.0, %v3058_v56 }
 0xfd8   : > { %v3060_v58 = vpop.eup %3059 }
 0xfd9   : > { %v2149_v62 = vadd.f32 1.0, %v3060_v58  ;;  %v2150_v63 = vmul.f32 %v2148_v57, %v2134_v59 }
 0xfdb   : > { %v2151_v1 = vmul.f32 %v2149_v62, %v2135_v61 }
 0xfdd   : > { %v2152_v2 = vpack.c.bf16 %v2151_v1, %v2150_v63 }
 0xfdf   : > { %2846 = vmatmul.mubr.msk.bf16.vlgmr.msra.gmra.mrb[36].mxu1 %vm2192_vm9, %v2152_v2 }
0x10b2   : > { %v2230_v7 = vpop.f32.mrb[36].mxu1 }
0x10b3   : > { %v2231_v8 = vadd.f32 %v2649_v4, %v2230_v7  ;;  %v2847_v9 = vpop.f32.mrb[37].mxu1 }
0x10b4   : > { %v2233_v10 = vpop.f32.mrb[38].mxu1 }
0x10b5   : > { %v2234_v11 = vadd.f32 %v2649_v4, %v2233_v10  ;;  %v2848_v12 = vpop.f32.mrb[39].mxu1  ;;  %v2237_v14 = vadd.f32 %v2231_v8, %v2064_v34  ;;  %v2656_v34 = vld [vmem:[%s806_s20] ss:$0 sm:$0xff] }
0x10b7   : > { %v2241_v15 = vsel %vm932_vm2, %v2237_v14, 0.0  ;;  %v2238_v17 = vadd.f32 %v2234_v11, %v2065_v35 }
0x10b8   : > { %2242 = vadd.xlane.f32.xlu1 %v2241_v15 }
0x10b9   : > { %v2244_v22 = vsel %vm932_vm2, %v2238_v17, 0.0 }
0x10ba   : > { %2245 = vadd.xlane.f32.xlu0 %v2244_v22 }
0x1145   : > { %v2243_v18 = vpop.xlane.xlu1 %2242 }
0x1146   : > { %v2247_v19 = vmul.f32 0.03125, %v2243_v18 }
0x1147   : > { %v2246_v5 = vpop.xlane.xlu0 %2245 }
0x1148   : > { %v2249_v29 = vsub.f32 %v2237_v14, %v2247_v19  ;;  %v2248_v6 = vmul.f32 0.03125, %v2246_v5 }
0x114a   : > { %v2250_v20 = vsub.f32 %v2238_v17, %v2248_v6  ;;  %v2251_v21 = vmul.f32 %v2249_v29, %v2249_v29 }
0x114c   : > { %v2253_v23 = vsel %vm932_vm2, %v2251_v21, 0.0  ;;  %v2252_v13 = vmul.f32 %v2250_v20, %v2250_v20 }
0x114d   : > { %2254 = vadd.xlane.f32.xlu1 %v2253_v23 }
0x114e   : > { %v2256_v24 = vsel %vm932_vm2, %v2252_v13, 0.0 }
0x114f   : > { %2257 = vadd.xlane.f32.xlu0 %v2256_v24 }
0x11da   : > { %v2255_v25 = vpop.xlane.xlu1 %2254 }
0x11db   : > { %v2259_v60 = vmul.f32 0.03125, %v2255_v25 }
0x11dc   : > { %v2258_v0 = vpop.xlane.xlu0 %2257 }
0x11dd   : > { %v2261_v26 = vadd.f32 1e-12, %v2259_v60  ;;  %v2260_v27 = vmul.f32 0.03125, %v2258_v0 }
0x11df   : > { %3061 = vrsqrt.f32 %v2261_v26  ;;  %v2262_v28 = vadd.f32 1e-12, %v2260_v27 }
0x11e1   : > { %3063 = vrsqrt.f32 %v2262_v28 }
0x11e9   : > { %v3062_v30 = vpop.eup %3061 }
0x11ea   : > { %v2265_v32 = vmul.f32 %v3062_v30, %v2249_v29 }
0x11eb   : > { %v3064_v33 = vpop.eup %3063 }
0x11ec   : > { %v2273_v35 = vmul.f32 %v2655_v31, %v2265_v32  ;;  %v2266_v36 = vmul.f32 %v3064_v33, %v2250_v20 }
0x11ee   : > { %v2274_v37 = vmul.f32 %v2655_v31, %v2266_v36  ;;  %v2281_v38 = vadd.f32 %v2656_v34, %v2273_v35 }
0x11f0   : > { %v2282_v39 = vadd.f32 %v2656_v34, %v2274_v37  ;;  %2283 = vst.msk [vmem:[#allocation20] sm:$0xff] %vm932_vm2, %v2281_v38 }
0x11f2   : > { %2284 = vst.msk [vmem:[#allocation20 + $0x8] sm:$0xff] %vm932_vm2, %v2282_v39 }
0x11f3   : > { %3494 = shalt.err (!%p3491_p11)
}
0x11f4   : > { %s4583_s4 = sld [smem:[#allocation42_spill]] }
0x11fa   : > { %s3495_s28 = scalar_lea.hbm %s4583_s4, 256 }
0x11fb   : > { %p3496_p5 = scmp.ne.s32.totalorder %s4583_s4, %s3495_s28  ;;  %p3501_p1 = scmp.lt.u32.totalorder %s3495_s28, %s4583_s4 }
0x11fd   : > { %p3497_p10 = pnand %p3496_p5, %p2934_p8 }
0x11ff   : > { %p3498_p7 = pneg %p3497_p10 }
0x1201   : > { %p3503_p9 = pnand %p3501_p1, %p3498_p7 }
0x1203   : > { %3506 = shalt.err (!%p3503_p9)
}
0x1204   : > { %s3608_s19 = smov 128  }
0x1205   : > { %2882 = dma.vmem_to_hbm [thread:$0]  (%p2934_p8), %s2295_s14, 256, %s4583_s4, [#allocation5], %s3608_s19, %s3608_s19, %s3604_s16  }
0x1206   : > { %3544 = dma.done.wait (%p2934_p8), [#allocation5], 256  }
0x1207   : > { %3546 = vsyncadd (%p2934_p8), [#allocation5], 4294967040 }
0x1208 PF: > { %s4584_s22 = sld [smem:[#allocation28_spill]]  ;;  %s4585_s29 = sld [smem:[#allocation25_spill]] }
0x1209   : > { %s4586_s30 = sld [smem:[#allocation26_spill]]  ;;  %s4587_s15 = sld [smem:[#allocation34_spill]] }
0x120a   : > { %s4588_s24 = sld [smem:[#allocation33_spill]]  ;;  %s4589_s16 = smov %s3565_s17 }
0x120e   : > { %s27_s18 = sadd.s32 1, %s4584_s22  }
0x120f   : > { %p24_p12 = scmp.ge.s32.totalorder %s27_s18, 4  }
0x1210   : > { %s4590_s17 = smov %s4588_s24 }
0x1211   :  { %26 = sbr.rel (!%p24_p12) target bundleno = 14 (0xe), region = 248 }
0x1218   :  { %2310 = vsyncpa [#allocation4], 1 }
0x1219   :  { %2312 = vsyncpa [#allocation4 + $0x1], 1 }
0x121a   :  { %2313 = vsyncpa [#allocation7], 1 }
0x121b   :  { %2314 = vsyncpa [#allocation5], 1 }
0x121c   :  { %2316 = vsyncpa [#allocation5 + $0x1], 1 }

</bundles_post_ra>
